<compile_context>
chip_gen: v7x
topology: tpu7x:2x2x1
jax: 0.10.0
libtpu: 0.0.40
codegen_flags: <defaults>
</compile_context>

<pallas_src>
import math
from functools import partial

import jax
import jax.numpy as jnp
from jax.experimental import pallas as pl
from jax.experimental.pallas import tpu as pltpu


# ----------------------------------------------------------------------------
# In-kernel helpers (traced inside the Pallas kernel)
# ----------------------------------------------------------------------------

def _layernorm(x, g, b, eps):
    mu = jnp.mean(x, axis=-1, keepdims=True)
    var = jnp.mean((x - mu) ** 2, axis=-1, keepdims=True)
    return (x - mu) * jax.lax.rsqrt(var + eps) * g + b


def _gelu_exact(x):   # erf GELU, matches HF BERT default
    return 0.5 * x * (1.0 + jax.lax.erf(x * (1.0 / math.sqrt(2.0))))


def _softmax_rows(s):
    s = s - jnp.max(s, axis=-1, keepdims=True)
    p = jnp.exp(s)
    return p * pl.reciprocal(jnp.sum(p, axis=-1, keepdims=True), approx=True)


# ----------------------------------------------------------------------------
# Fully fused BERT forward kernel (no grid: everything resident in VMEM)
# ----------------------------------------------------------------------------

def _bert_forward_kernel(emb_ref, maskb_ref, embg_ref, embb_ref,
                         wqkv_ref, bqkv_ref, wao_ref, bao_ref,
                         ln1g_ref, ln1b_ref, wi_ref, bi_ref,
                         wo_ref, bo_ref, ln2g_ref, ln2b_ref,
                         poolw_ref, poolb_ref, fcw_ref, fcb_ref,
                         logits_ref, *, B, S, H, nH, Dh, L, eps):
    scale = 1.0 / math.sqrt(Dh)
    bf16 = jnp.bfloat16

    # Embedding LayerNorm (embedding dropout is eval-mode identity).
    h = _layernorm(emb_ref[...], embg_ref[...], embb_ref[...], eps)     # (B*S, H) f32
    mask3 = maskb_ref[...][:, None, :]                                   # (B, 1, S) additive

    for l in range(L):                       # unrolled layer loop, static ref indexing
        # ---- fused QKV projection: one (BS,H) x (H,3H) MXU op ----
        qkv = jnp.dot(h.astype(bf16), wqkv_ref[l],
                      preferred_element_type=jnp.float32) + bqkv_ref[l]  # (BS, 3H) f32

        # ---- multi-head attention, batched over B per head ----
        attn = None
        for hh in range(nH):
            q = qkv[:, hh * Dh:(hh + 1) * Dh].reshape(B, S, Dh).astype(bf16)
            k = qkv[:, H + hh * Dh:H + (hh + 1) * Dh].reshape(B, S, Dh).astype(bf16)
            v = qkv[:, 2 * H + hh * Dh:2 * H + (hh + 1) * Dh].reshape(B, S, Dh).astype(bf16)

            s = jax.lax.dot_general(q, k, (((2,), (2,)), ((0,), (0,))),
                                    preferred_element_type=jnp.float32) * scale
            s = s + mask3                                                # (B, S, S)
            p = _softmax_rows(s)
            ctx = jax.lax.dot_general(p.astype(bf16), v,
                                      (((2,), (1,)), ((0,), (0,))),
                                      preferred_element_type=jnp.float32)  # (B, S, Dh)
            contrib = jnp.dot(ctx.reshape(B * S, Dh).astype(bf16), wao_ref[l, hh],
                              preferred_element_type=jnp.float32)          # (BS, H)
            attn = contrib if attn is None else attn + contrib

        attn_out = attn + bao_ref[l]
        h1 = _layernorm(attn_out + h, ln1g_ref[l], ln1b_ref[l], eps)

        # ---- feed-forward (GELU) ----
        ffn = _gelu_exact(jnp.dot(h1.astype(bf16), wi_ref[l],
                                  preferred_element_type=jnp.float32) + bi_ref[l])
        ffn_out = jnp.dot(ffn.astype(bf16), wo_ref[l],
                          preferred_element_type=jnp.float32) + bo_ref[l]
        h = _layernorm(ffn_out + h1, ln2g_ref[l], ln2b_ref[l], eps)

    # ---- pooler (tanh on [CLS]) + dropout(eval: identity) + classifier, all batches at once ----
    cls = h.reshape(B, S, H)[:, 0, :]                                    # (B, H)
    pooled = jnp.tanh(jnp.dot(cls.astype(bf16), poolw_ref[...],
                              preferred_element_type=jnp.float32) + poolb_ref[...])
    # TODO(synk): training-mode dropout (stateful PRNG masking) not implemented; eval identity.
    logits_ref[...] = (jnp.dot(pooled.astype(bf16), fcw_ref[...],
                               preferred_element_type=jnp.float32) + fcb_ref[...])


# ----------------------------------------------------------------------------
# Model config / parameters (deterministic init; bf16 MXU-facing weights)
# ----------------------------------------------------------------------------

class Config:
    vocab_size = 100
    hidden = 32
    num_layers = 2
    num_heads = 4
    intermediate = 64
    max_pos = 16
    num_classes = 2          # ['cyberbullying', 'not_cyberbullying']


def init_params(key, cfg):
    H, I, L = cfg.hidden, cfg.intermediate, cfg.num_layers
    nH = cfg.num_heads
    Dh = H // nH
    C = cfg.num_classes
    bf16 = jnp.bfloat16

    def nrm(k, shape, dtype=jnp.float32):
        return (jax.random.normal(k, shape, jnp.float32) * 0.02).astype(dtype)

    keys = iter(jax.random.split(key, 16))
    return {
        "word_emb": nrm(next(keys), (cfg.vocab_size, H)),
        "pos_emb": nrm(next(keys), (cfg.max_pos, H)),
        "type_emb": nrm(next(keys), (2, H)),
        "emb_ln_g": jnp.ones((1, H), jnp.float32),
        "emb_ln_b": jnp.zeros((1, H), jnp.float32),
        # Fused [Q|K|V] projection per layer; attention output projection pre-split
        # per head (pure re-layout of the canonical (H,H) weight).
        "w_qkv": nrm(next(keys), (L, H, 3 * H), bf16),
        "b_qkv": jnp.zeros((L, 1, 3 * H), jnp.float32),
        "w_ao": nrm(next(keys), (L, nH, Dh, H), bf16),
        "b_ao": jnp.zeros((L, 1, H), jnp.float32),
        "ln1_g": jnp.ones((L, 1, H), jnp.float32),
        "ln1_b": jnp.zeros((L, 1, H), jnp.float32),
        "w_i": nrm(next(keys), (L, H, I), bf16),
        "b_i": jnp.zeros((L, 1, I), jnp.float32),
        "w_o": nrm(next(keys), (L, I, H), bf16),
        "b_o": jnp.zeros((L, 1, H), jnp.float32),
        "ln2_g": jnp.ones((L, 1, H), jnp.float32),
        "ln2_b": jnp.zeros((L, 1, H), jnp.float32),
        "pool_w": nrm(next(keys), (H, H), bf16),
        "pool_b": jnp.zeros((1, H), jnp.float32),
        "fc_w": nrm(next(keys), (H, C), bf16),
        "fc_b": jnp.zeros((1, C), jnp.float32),
    }


# ----------------------------------------------------------------------------
# Forward: embedding gather in XLA glue, everything else in one pallas_call
# ----------------------------------------------------------------------------

def bert_classifier_forward(params, input_ids, attention_mask, cfg):
    B, S = input_ids.shape
    H, nH, L, C = cfg.hidden, cfg.num_heads, cfg.num_layers, cfg.num_classes
    Dh = H // nH

    # Embedding lookup (gather) + sum stays in XLA; token-type is all zeros.
    emb = (jnp.take(params["word_emb"], input_ids, axis=0)
           + params["pos_emb"][:S][None, :, :]
           + params["type_emb"][0][None, None, :]).reshape(B * S, H)

    # Additive key-mask bias, kept at (B, S); broadcast happens inside the kernel.
    mask_bias = (1.0 - attention_mask.astype(jnp.float32)) * -1e9        # (B, S)

    kernel = partial(_bert_forward_kernel,
                     B=B, S=S, H=H, nH=nH, Dh=Dh, L=L, eps=1e-12)

    vmem = pl.BlockSpec(memory_space=pltpu.MemorySpace.VMEM)   # whole array in VMEM

    logits = pl.pallas_call(
        kernel,
        out_shape=jax.ShapeDtypeStruct((B, C), jnp.float32),
        in_specs=[vmem] * 20,
        out_specs=vmem,
    )(emb, mask_bias,
      params["emb_ln_g"], params["emb_ln_b"],
      params["w_qkv"], params["b_qkv"], params["w_ao"], params["b_ao"],
      params["ln1_g"], params["ln1_b"], params["w_i"], params["b_i"],
      params["w_o"], params["b_o"], params["ln2_g"], params["ln2_b"],
      params["pool_w"], params["pool_b"], params["fc_w"], params["fc_b"])
    return logits


if __name__ == "__main__":
    cfg = Config()
    key = jax.random.PRNGKey(0)
    pkey, dkey = jax.random.split(key)

    params = init_params(pkey, cfg)

    B, S = 2, 8
    input_ids = jax.random.randint(dkey, (B, S), 0, cfg.vocab_size, dtype=jnp.int32)
    attention_mask = jnp.concatenate(
        [jnp.ones((B, S - 2), jnp.int32), jnp.zeros((B, 2), jnp.int32)], axis=1)

    @jax.jit
    def fwd(p, ids, mask):
        return bert_classifier_forward(p, ids, mask, cfg)

    logits = jax.block_until_ready(fwd(params, input_ids, attention_mask))
    assert logits.shape == (B, cfg.num_classes)
    assert bool(jnp.all(jnp.isfinite(logits)))
    print("KERNEL_OK")
</pallas_src>

<mosaic_0001>
module attributes {stable_mosaic.version = 11 : i64} {
  func.func @_bert_forward_kernel(%arg0: memref<16x32xf32, #tpu.memory_space<vmem>>, %arg1: memref<2x8xf32, #tpu.memory_space<vmem>>, %arg2: memref<1x32xf32, #tpu.memory_space<vmem>>, %arg3: memref<1x32xf32, #tpu.memory_space<vmem>>, %arg4: memref<2x32x96xbf16, #tpu.memory_space<vmem>>, %arg5: memref<2x1x96xf32, #tpu.memory_space<vmem>>, %arg6: memref<2x4x8x32xbf16, #tpu.memory_space<vmem>>, %arg7: memref<2x1x32xf32, #tpu.memory_space<vmem>>, %arg8: memref<2x1x32xf32, #tpu.memory_space<vmem>>, %arg9: memref<2x1x32xf32, #tpu.memory_space<vmem>>, %arg10: memref<2x32x64xbf16, #tpu.memory_space<vmem>>, %arg11: memref<2x1x64xf32, #tpu.memory_space<vmem>>, %arg12: memref<2x64x32xbf16, #tpu.memory_space<vmem>>, %arg13: memref<2x1x32xf32, #tpu.memory_space<vmem>>, %arg14: memref<2x1x32xf32, #tpu.memory_space<vmem>>, %arg15: memref<2x1x32xf32, #tpu.memory_space<vmem>>, %arg16: memref<32x32xbf16, #tpu.memory_space<vmem>>, %arg17: memref<1x32xf32, #tpu.memory_space<vmem>>, %arg18: memref<32x2xbf16, #tpu.memory_space<vmem>>, %arg19: memref<1x2xf32, #tpu.memory_space<vmem>>, %arg20: memref<2x2xf32, #tpu.memory_space<vmem>>) attributes {dimension_semantics = [], scalar_prefetch = 0 : i64, scratch_operands = 0 : i64, tpu.core_type = #tpu.core_type<tc>} {
    %c0 = arith.constant 0 : index
    %c0_0 = arith.constant 0 : index
    %0 = vector.load %arg0[%c0, %c0_0] : memref<16x32xf32, #tpu.memory_space<vmem>>, vector<16x32xf32>
    %c0_1 = arith.constant 0 : index
    %c0_2 = arith.constant 0 : index
    %1 = vector.load %arg2[%c0_1, %c0_2] : memref<1x32xf32, #tpu.memory_space<vmem>>, vector<1x32xf32>
    %c0_3 = arith.constant 0 : index
    %c0_4 = arith.constant 0 : index
    %2 = vector.load %arg3[%c0_3, %c0_4] : memref<1x32xf32, #tpu.memory_space<vmem>>, vector<1x32xf32>
    %cst = arith.constant dense<0.000000e+00> : vector<16xf32>
    %3 = vector.multi_reduction <add>, %0, %cst [1] : vector<16x32xf32> to vector<16xf32>
    %4 = vector.shape_cast %3 : vector<16xf32> to vector<16x1xf32>
    %cst_5 = arith.constant 3.200000e+01 : f32
    %5 = vector.broadcast %cst_5 : f32 to vector<16x1xf32>
    %6 = arith.divf %4, %5 : vector<16x1xf32>
    %7 = vector.broadcast %6 : vector<16x1xf32> to vector<16x32xf32>
    %8 = arith.subf %0, %7 : vector<16x32xf32>
    %9 = arith.mulf %8, %8 : vector<16x32xf32>
    %cst_6 = arith.constant dense<0.000000e+00> : vector<16xf32>
    %10 = vector.multi_reduction <add>, %9, %cst_6 [1] : vector<16x32xf32> to vector<16xf32>
    %11 = vector.shape_cast %10 : vector<16xf32> to vector<16x1xf32>
    %cst_7 = arith.constant 3.200000e+01 : f32
    %12 = vector.broadcast %cst_7 : f32 to vector<16x1xf32>
    %13 = arith.divf %11, %12 : vector<16x1xf32>
    %14 = vector.broadcast %6 : vector<16x1xf32> to vector<16x32xf32>
    %15 = arith.subf %0, %14 : vector<16x32xf32>
    %cst_8 = arith.constant 9.99999996E-13 : f32
    %16 = vector.broadcast %cst_8 : f32 to vector<16x1xf32>
    %17 = arith.addf %13, %16 : vector<16x1xf32>
    %18 = math.rsqrt %17 : vector<16x1xf32>
    %19 = vector.broadcast %18 : vector<16x1xf32> to vector<16x32xf32>
    %20 = arith.mulf %15, %19 : vector<16x32xf32>
    %21 = vector.broadcast %1 : vector<1x32xf32> to vector<16x32xf32>
    %22 = arith.mulf %20, %21 : vector<16x32xf32>
    %23 = vector.broadcast %2 : vector<1x32xf32> to vector<16x32xf32>
    %24 = arith.addf %22, %23 : vector<16x32xf32>
    %c0_9 = arith.constant 0 : index
    %c0_10 = arith.constant 0 : index
    %25 = vector.load %arg1[%c0_9, %c0_10] : memref<2x8xf32, #tpu.memory_space<vmem>>, vector<2x8xf32>
    %26 = vector.shape_cast %25 : vector<2x8xf32> to vector<2x1x8xf32>
    %27 = arith.truncf %24 : vector<16x32xf32> to vector<16x32xbf16>
    %c0_11 = arith.constant 0 : index
    %c0_12 = arith.constant 0 : index
    %c0_13 = arith.constant 0 : index
    %28 = vector.load %arg4[%c0_11, %c0_12, %c0_13] : memref<2x32x96xbf16, #tpu.memory_space<vmem>>, vector<1x32x96xbf16>
    %29 = vector.shape_cast %28 : vector<1x32x96xbf16> to vector<32x96xbf16>
    %cst_14 = arith.constant dense<0.000000e+00> : vector<16x96xf32>
    %30 = tpu.matmul %27, %29, %cst_14 {dimension_numbers = #tpu.dot_dimension_numbers<[1], [0], [0], [1], [0, 0, 1, 1], [], []>} : vector<16x32xbf16>, vector<32x96xbf16>, vector<16x96xf32> -> vector<16x96xf32>
    %c0_15 = arith.constant 0 : index
    %c0_16 = arith.constant 0 : index
    %c0_17 = arith.constant 0 : index
    %31 = vector.load %arg5[%c0_15, %c0_16, %c0_17] : memref<2x1x96xf32, #tpu.memory_space<vmem>>, vector<1x1x96xf32>
    %32 = vector.shape_cast %31 : vector<1x1x96xf32> to vector<1x96xf32>
    %33 = vector.broadcast %32 : vector<1x96xf32> to vector<16x96xf32>
    %34 = arith.addf %30, %33 : vector<16x96xf32>
    %35 = vector.extract_strided_slice %34 {offsets = [0, 0], sizes = [16, 8], strides = [1, 1]} : vector<16x96xf32> to vector<16x8xf32>
    %36 = vector.shape_cast %35 : vector<16x8xf32> to vector<2x8x8xf32>
    %37 = arith.truncf %36 : vector<2x8x8xf32> to vector<2x8x8xbf16>
    %38 = vector.extract_strided_slice %34 {offsets = [0, 32], sizes = [16, 8], strides = [1, 1]} : vector<16x96xf32> to vector<16x8xf32>
    %39 = vector.shape_cast %38 : vector<16x8xf32> to vector<2x8x8xf32>
    %40 = arith.truncf %39 : vector<2x8x8xf32> to vector<2x8x8xbf16>
    %41 = vector.extract_strided_slice %34 {offsets = [0, 64], sizes = [16, 8], strides = [1, 1]} : vector<16x96xf32> to vector<16x8xf32>
    %42 = vector.shape_cast %41 : vector<16x8xf32> to vector<2x8x8xf32>
    %43 = arith.truncf %42 : vector<2x8x8xf32> to vector<2x8x8xbf16>
    %cst_18 = arith.constant dense<0.000000e+00> : vector<2x8x8xf32>
    %44 = tpu.matmul %37, %40, %cst_18 {dimension_numbers = #tpu.dot_dimension_numbers<[2], [2], [1], [1], [0, 0, 0, 1, 1, 1], [0], [0]>} : vector<2x8x8xbf16>, vector<2x8x8xbf16>, vector<2x8x8xf32> -> vector<2x8x8xf32>
    %cst_19 = arith.constant 0.353553385 : f32
    %45 = vector.broadcast %cst_19 : f32 to vector<2x8x8xf32>
    %46 = arith.mulf %44, %45 : vector<2x8x8xf32>
    %47 = vector.broadcast %26 : vector<2x1x8xf32> to vector<2x8x8xf32>
    %48 = arith.addf %46, %47 : vector<2x8x8xf32>
    %cst_20 = arith.constant dense<0xFF800000> : vector<2x8xf32>
    %49 = vector.multi_reduction <maximumf>, %48, %cst_20 [2] : vector<2x8x8xf32> to vector<2x8xf32>
    %50 = vector.shape_cast %49 : vector<2x8xf32> to vector<2x8x1xf32>
    %51 = vector.broadcast %50 : vector<2x8x1xf32> to vector<2x8x8xf32>
    %52 = arith.subf %48, %51 : vector<2x8x8xf32>
    %53 = math.exp %52 : vector<2x8x8xf32>
    %cst_21 = arith.constant dense<0.000000e+00> : vector<2x8xf32>
    %54 = vector.multi_reduction <add>, %53, %cst_21 [2] : vector<2x8x8xf32> to vector<2x8xf32>
    %55 = vector.shape_cast %54 : vector<2x8xf32> to vector<2x8x1xf32>
    %56 = tpu.reciprocal %55 {approx = true} : vector<2x8x1xf32> -> vector<2x8x1xf32>
    %57 = vector.broadcast %56 : vector<2x8x1xf32> to vector<2x8x8xf32>
    %58 = arith.mulf %53, %57 : vector<2x8x8xf32>
    %59 = arith.truncf %58 : vector<2x8x8xf32> to vector<2x8x8xbf16>
    %cst_22 = arith.constant dense<0.000000e+00> : vector<2x8x8xf32>
    %60 = tpu.matmul %59, %43, %cst_22 {dimension_numbers = #tpu.dot_dimension_numbers<[2], [1], [1], [2], [0, 0, 0, 1, 1, 2], [0], [0]>} : vector<2x8x8xbf16>, vector<2x8x8xbf16>, vector<2x8x8xf32> -> vector<2x8x8xf32>
    %61 = vector.shape_cast %60 : vector<2x8x8xf32> to vector<16x8xf32>
    %62 = arith.truncf %61 : vector<16x8xf32> to vector<16x8xbf16>
    %c0_23 = arith.constant 0 : index
    %c0_24 = arith.constant 0 : index
    %c0_25 = arith.constant 0 : index
    %c0_26 = arith.constant 0 : index
    %63 = vector.load %arg6[%c0_23, %c0_24, %c0_25, %c0_26] : memref<2x4x8x32xbf16, #tpu.memory_space<vmem>>, vector<1x1x8x32xbf16>
    %64 = vector.shape_cast %63 : vector<1x1x8x32xbf16> to vector<8x32xbf16>
    %cst_27 = arith.constant dense<0.000000e+00> : vector<16x32xf32>
    %65 = tpu.matmul %62, %64, %cst_27 {dimension_numbers = #tpu.dot_dimension_numbers<[1], [0], [0], [1], [0, 0, 1, 1], [], []>} : vector<16x8xbf16>, vector<8x32xbf16>, vector<16x32xf32> -> vector<16x32xf32>
    %66 = vector.extract_strided_slice %34 {offsets = [0, 8], sizes = [16, 8], strides = [1, 1]} : vector<16x96xf32> to vector<16x8xf32>
    %67 = vector.shape_cast %66 : vector<16x8xf32> to vector<2x8x8xf32>
    %68 = arith.truncf %67 : vector<2x8x8xf32> to vector<2x8x8xbf16>
    %69 = vector.extract_strided_slice %34 {offsets = [0, 40], sizes = [16, 8], strides = [1, 1]} : vector<16x96xf32> to vector<16x8xf32>
    %70 = vector.shape_cast %69 : vector<16x8xf32> to vector<2x8x8xf32>
    %71 = arith.truncf %70 : vector<2x8x8xf32> to vector<2x8x8xbf16>
    %72 = vector.extract_strided_slice %34 {offsets = [0, 72], sizes = [16, 8], strides = [1, 1]} : vector<16x96xf32> to vector<16x8xf32>
    %73 = vector.shape_cast %72 : vector<16x8xf32> to vector<2x8x8xf32>
    %74 = arith.truncf %73 : vector<2x8x8xf32> to vector<2x8x8xbf16>
    %cst_28 = arith.constant dense<0.000000e+00> : vector<2x8x8xf32>
    %75 = tpu.matmul %68, %71, %cst_28 {dimension_numbers = #tpu.dot_dimension_numbers<[2], [2], [1], [1], [0, 0, 0, 1, 1, 1], [0], [0]>} : vector<2x8x8xbf16>, vector<2x8x8xbf16>, vector<2x8x8xf32> -> vector<2x8x8xf32>
    %cst_29 = arith.constant 0.353553385 : f32
    %76 = vector.broadcast %cst_29 : f32 to vector<2x8x8xf32>
    %77 = arith.mulf %75, %76 : vector<2x8x8xf32>
    %78 = vector.broadcast %26 : vector<2x1x8xf32> to vector<2x8x8xf32>
    %79 = arith.addf %77, %78 : vector<2x8x8xf32>
    %cst_30 = arith.constant dense<0xFF800000> : vector<2x8xf32>
    %80 = vector.multi_reduction <maximumf>, %79, %cst_30 [2] : vector<2x8x8xf32> to vector<2x8xf32>
    %81 = vector.shape_cast %80 : vector<2x8xf32> to vector<2x8x1xf32>
    %82 = vector.broadcast %81 : vector<2x8x1xf32> to vector<2x8x8xf32>
    %83 = arith.subf %79, %82 : vector<2x8x8xf32>
    %84 = math.exp %83 : vector<2x8x8xf32>
    %cst_31 = arith.constant dense<0.000000e+00> : vector<2x8xf32>
    %85 = vector.multi_reduction <add>, %84, %cst_31 [2] : vector<2x8x8xf32> to vector<2x8xf32>
    %86 = vector.shape_cast %85 : vector<2x8xf32> to vector<2x8x1xf32>
    %87 = tpu.reciprocal %86 {approx = true} : vector<2x8x1xf32> -> vector<2x8x1xf32>
    %88 = vector.broadcast %87 : vector<2x8x1xf32> to vector<2x8x8xf32>
    %89 = arith.mulf %84, %88 : vector<2x8x8xf32>
    %90 = arith.truncf %89 : vector<2x8x8xf32> to vector<2x8x8xbf16>
    %cst_32 = arith.constant dense<0.000000e+00> : vector<2x8x8xf32>
    %91 = tpu.matmul %90, %74, %cst_32 {dimension_numbers = #tpu.dot_dimension_numbers<[2], [1], [1], [2], [0, 0, 0, 1, 1, 2], [0], [0]>} : vector<2x8x8xbf16>, vector<2x8x8xbf16>, vector<2x8x8xf32> -> vector<2x8x8xf32>
    %92 = vector.shape_cast %91 : vector<2x8x8xf32> to vector<16x8xf32>
    %93 = arith.truncf %92 : vector<16x8xf32> to vector<16x8xbf16>
    %c0_33 = arith.constant 0 : index
    %c1 = arith.constant 1 : index
    %c0_34 = arith.constant 0 : index
    %c0_35 = arith.constant 0 : index
    %94 = vector.load %arg6[%c0_33, %c1, %c0_34, %c0_35] : memref<2x4x8x32xbf16, #tpu.memory_space<vmem>>, vector<1x1x8x32xbf16>
    %95 = vector.shape_cast %94 : vector<1x1x8x32xbf16> to vector<8x32xbf16>
    %cst_36 = arith.constant dense<0.000000e+00> : vector<16x32xf32>
    %96 = tpu.matmul %93, %95, %cst_36 {dimension_numbers = #tpu.dot_dimension_numbers<[1], [0], [0], [1], [0, 0, 1, 1], [], []>} : vector<16x8xbf16>, vector<8x32xbf16>, vector<16x32xf32> -> vector<16x32xf32>
    %97 = arith.addf %65, %96 : vector<16x32xf32>
    %98 = vector.extract_strided_slice %34 {offsets = [0, 16], sizes = [16, 8], strides = [1, 1]} : vector<16x96xf32> to vector<16x8xf32>
    %99 = vector.shape_cast %98 : vector<16x8xf32> to vector<2x8x8xf32>
    %100 = arith.truncf %99 : vector<2x8x8xf32> to vector<2x8x8xbf16>
    %101 = vector.extract_strided_slice %34 {offsets = [0, 48], sizes = [16, 8], strides = [1, 1]} : vector<16x96xf32> to vector<16x8xf32>
    %102 = vector.shape_cast %101 : vector<16x8xf32> to vector<2x8x8xf32>
    %103 = arith.truncf %102 : vector<2x8x8xf32> to vector<2x8x8xbf16>
    %104 = vector.extract_strided_slice %34 {offsets = [0, 80], sizes = [16, 8], strides = [1, 1]} : vector<16x96xf32> to vector<16x8xf32>
    %105 = vector.shape_cast %104 : vector<16x8xf32> to vector<2x8x8xf32>
    %106 = arith.truncf %105 : vector<2x8x8xf32> to vector<2x8x8xbf16>
    %cst_37 = arith.constant dense<0.000000e+00> : vector<2x8x8xf32>
    %107 = tpu.matmul %100, %103, %cst_37 {dimension_numbers = #tpu.dot_dimension_numbers<[2], [2], [1], [1], [0, 0, 0, 1, 1, 1], [0], [0]>} : vector<2x8x8xbf16>, vector<2x8x8xbf16>, vector<2x8x8xf32> -> vector<2x8x8xf32>
    %cst_38 = arith.constant 0.353553385 : f32
    %108 = vector.broadcast %cst_38 : f32 to vector<2x8x8xf32>
    %109 = arith.mulf %107, %108 : vector<2x8x8xf32>
    %110 = vector.broadcast %26 : vector<2x1x8xf32> to vector<2x8x8xf32>
    %111 = arith.addf %109, %110 : vector<2x8x8xf32>
    %cst_39 = arith.constant dense<0xFF800000> : vector<2x8xf32>
    %112 = vector.multi_reduction <maximumf>, %111, %cst_39 [2] : vector<2x8x8xf32> to vector<2x8xf32>
    %113 = vector.shape_cast %112 : vector<2x8xf32> to vector<2x8x1xf32>
    %114 = vector.broadcast %113 : vector<2x8x1xf32> to vector<2x8x8xf32>
    %115 = arith.subf %111, %114 : vector<2x8x8xf32>
    %116 = math.exp %115 : vector<2x8x8xf32>
    %cst_40 = arith.constant dense<0.000000e+00> : vector<2x8xf32>
    %117 = vector.multi_reduction <add>, %116, %cst_40 [2] : vector<2x8x8xf32> to vector<2x8xf32>
    %118 = vector.shape_cast %117 : vector<2x8xf32> to vector<2x8x1xf32>
    %119 = tpu.reciprocal %118 {approx = true} : vector<2x8x1xf32> -> vector<2x8x1xf32>
    %120 = vector.broadcast %119 : vector<2x8x1xf32> to vector<2x8x8xf32>
    %121 = arith.mulf %116, %120 : vector<2x8x8xf32>
    %122 = arith.truncf %121 : vector<2x8x8xf32> to vector<2x8x8xbf16>
    %cst_41 = arith.constant dense<0.000000e+00> : vector<2x8x8xf32>
    %123 = tpu.matmul %122, %106, %cst_41 {dimension_numbers = #tpu.dot_dimension_numbers<[2], [1], [1], [2], [0, 0, 0, 1, 1, 2], [0], [0]>} : vector<2x8x8xbf16>, vector<2x8x8xbf16>, vector<2x8x8xf32> -> vector<2x8x8xf32>
    %124 = vector.shape_cast %123 : vector<2x8x8xf32> to vector<16x8xf32>
    %125 = arith.truncf %124 : vector<16x8xf32> to vector<16x8xbf16>
    %c0_42 = arith.constant 0 : index
    %c2 = arith.constant 2 : index
    %c0_43 = arith.constant 0 : index
    %c0_44 = arith.constant 0 : index
    %126 = vector.load %arg6[%c0_42, %c2, %c0_43, %c0_44] : memref<2x4x8x32xbf16, #tpu.memory_space<vmem>>, vector<1x1x8x32xbf16>
    %127 = vector.shape_cast %126 : vector<1x1x8x32xbf16> to vector<8x32xbf16>
    %cst_45 = arith.constant dense<0.000000e+00> : vector<16x32xf32>
    %128 = tpu.matmul %125, %127, %cst_45 {dimension_numbers = #tpu.dot_dimension_numbers<[1], [0], [0], [1], [0, 0, 1, 1], [], []>} : vector<16x8xbf16>, vector<8x32xbf16>, vector<16x32xf32> -> vector<16x32xf32>
    %129 = arith.addf %97, %128 : vector<16x32xf32>
    %130 = vector.extract_strided_slice %34 {offsets = [0, 24], sizes = [16, 8], strides = [1, 1]} : vector<16x96xf32> to vector<16x8xf32>
    %131 = vector.shape_cast %130 : vector<16x8xf32> to vector<2x8x8xf32>
    %132 = arith.truncf %131 : vector<2x8x8xf32> to vector<2x8x8xbf16>
    %133 = vector.extract_strided_slice %34 {offsets = [0, 56], sizes = [16, 8], strides = [1, 1]} : vector<16x96xf32> to vector<16x8xf32>
    %134 = vector.shape_cast %133 : vector<16x8xf32> to vector<2x8x8xf32>
    %135 = arith.truncf %134 : vector<2x8x8xf32> to vector<2x8x8xbf16>
    %136 = vector.extract_strided_slice %34 {offsets = [0, 88], sizes = [16, 8], strides = [1, 1]} : vector<16x96xf32> to vector<16x8xf32>
    %137 = vector.shape_cast %136 : vector<16x8xf32> to vector<2x8x8xf32>
    %138 = arith.truncf %137 : vector<2x8x8xf32> to vector<2x8x8xbf16>
    %cst_46 = arith.constant dense<0.000000e+00> : vector<2x8x8xf32>
    %139 = tpu.matmul %132, %135, %cst_46 {dimension_numbers = #tpu.dot_dimension_numbers<[2], [2], [1], [1], [0, 0, 0, 1, 1, 1], [0], [0]>} : vector<2x8x8xbf16>, vector<2x8x8xbf16>, vector<2x8x8xf32> -> vector<2x8x8xf32>
    %cst_47 = arith.constant 0.353553385 : f32
    %140 = vector.broadcast %cst_47 : f32 to vector<2x8x8xf32>
    %141 = arith.mulf %139, %140 : vector<2x8x8xf32>
    %142 = vector.broadcast %26 : vector<2x1x8xf32> to vector<2x8x8xf32>
    %143 = arith.addf %141, %142 : vector<2x8x8xf32>
    %cst_48 = arith.constant dense<0xFF800000> : vector<2x8xf32>
    %144 = vector.multi_reduction <maximumf>, %143, %cst_48 [2] : vector<2x8x8xf32> to vector<2x8xf32>
    %145 = vector.shape_cast %144 : vector<2x8xf32> to vector<2x8x1xf32>
    %146 = vector.broadcast %145 : vector<2x8x1xf32> to vector<2x8x8xf32>
    %147 = arith.subf %143, %146 : vector<2x8x8xf32>
    %148 = math.exp %147 : vector<2x8x8xf32>
    %cst_49 = arith.constant dense<0.000000e+00> : vector<2x8xf32>
    %149 = vector.multi_reduction <add>, %148, %cst_49 [2] : vector<2x8x8xf32> to vector<2x8xf32>
    %150 = vector.shape_cast %149 : vector<2x8xf32> to vector<2x8x1xf32>
    %151 = tpu.reciprocal %150 {approx = true} : vector<2x8x1xf32> -> vector<2x8x1xf32>
    %152 = vector.broadcast %151 : vector<2x8x1xf32> to vector<2x8x8xf32>
    %153 = arith.mulf %148, %152 : vector<2x8x8xf32>
    %154 = arith.truncf %153 : vector<2x8x8xf32> to vector<2x8x8xbf16>
    %cst_50 = arith.constant dense<0.000000e+00> : vector<2x8x8xf32>
    %155 = tpu.matmul %154, %138, %cst_50 {dimension_numbers = #tpu.dot_dimension_numbers<[2], [1], [1], [2], [0, 0, 0, 1, 1, 2], [0], [0]>} : vector<2x8x8xbf16>, vector<2x8x8xbf16>, vector<2x8x8xf32> -> vector<2x8x8xf32>
    %156 = vector.shape_cast %155 : vector<2x8x8xf32> to vector<16x8xf32>
    %157 = arith.truncf %156 : vector<16x8xf32> to vector<16x8xbf16>
    %c0_51 = arith.constant 0 : index
    %c3 = arith.constant 3 : index
    %c0_52 = arith.constant 0 : index
    %c0_53 = arith.constant 0 : index
    %158 = vector.load %arg6[%c0_51, %c3, %c0_52, %c0_53] : memref<2x4x8x32xbf16, #tpu.memory_space<vmem>>, vector<1x1x8x32xbf16>
    %159 = vector.shape_cast %158 : vector<1x1x8x32xbf16> to vector<8x32xbf16>
    %cst_54 = arith.constant dense<0.000000e+00> : vector<16x32xf32>
    %160 = tpu.matmul %157, %159, %cst_54 {dimension_numbers = #tpu.dot_dimension_numbers<[1], [0], [0], [1], [0, 0, 1, 1], [], []>} : vector<16x8xbf16>, vector<8x32xbf16>, vector<16x32xf32> -> vector<16x32xf32>
    %161 = arith.addf %129, %160 : vector<16x32xf32>
    %c0_55 = arith.constant 0 : index
    %c0_56 = arith.constant 0 : index
    %c0_57 = arith.constant 0 : index
    %162 = vector.load %arg7[%c0_55, %c0_56, %c0_57] : memref<2x1x32xf32, #tpu.memory_space<vmem>>, vector<1x1x32xf32>
    %163 = vector.shape_cast %162 : vector<1x1x32xf32> to vector<1x32xf32>
    %164 = vector.broadcast %163 : vector<1x32xf32> to vector<16x32xf32>
    %165 = arith.addf %161, %164 : vector<16x32xf32>
    %166 = arith.addf %165, %24 : vector<16x32xf32>
    %c0_58 = arith.constant 0 : index
    %c0_59 = arith.constant 0 : index
    %c0_60 = arith.constant 0 : index
    %167 = vector.load %arg8[%c0_58, %c0_59, %c0_60] : memref<2x1x32xf32, #tpu.memory_space<vmem>>, vector<1x1x32xf32>
    %168 = vector.shape_cast %167 : vector<1x1x32xf32> to vector<1x32xf32>
    %c0_61 = arith.constant 0 : index
    %c0_62 = arith.constant 0 : index
    %c0_63 = arith.constant 0 : index
    %169 = vector.load %arg9[%c0_61, %c0_62, %c0_63] : memref<2x1x32xf32, #tpu.memory_space<vmem>>, vector<1x1x32xf32>
    %170 = vector.shape_cast %169 : vector<1x1x32xf32> to vector<1x32xf32>
    %cst_64 = arith.constant dense<0.000000e+00> : vector<16xf32>
    %171 = vector.multi_reduction <add>, %166, %cst_64 [1] : vector<16x32xf32> to vector<16xf32>
    %172 = vector.shape_cast %171 : vector<16xf32> to vector<16x1xf32>
    %cst_65 = arith.constant 3.200000e+01 : f32
    %173 = vector.broadcast %cst_65 : f32 to vector<16x1xf32>
    %174 = arith.divf %172, %173 : vector<16x1xf32>
    %175 = vector.broadcast %174 : vector<16x1xf32> to vector<16x32xf32>
    %176 = arith.subf %166, %175 : vector<16x32xf32>
    %177 = arith.mulf %176, %176 : vector<16x32xf32>
    %cst_66 = arith.constant dense<0.000000e+00> : vector<16xf32>
    %178 = vector.multi_reduction <add>, %177, %cst_66 [1] : vector<16x32xf32> to vector<16xf32>
    %179 = vector.shape_cast %178 : vector<16xf32> to vector<16x1xf32>
    %cst_67 = arith.constant 3.200000e+01 : f32
    %180 = vector.broadcast %cst_67 : f32 to vector<16x1xf32>
    %181 = arith.divf %179, %180 : vector<16x1xf32>
    %182 = vector.broadcast %174 : vector<16x1xf32> to vector<16x32xf32>
    %183 = arith.subf %166, %182 : vector<16x32xf32>
    %cst_68 = arith.constant 9.99999996E-13 : f32
    %184 = vector.broadcast %cst_68 : f32 to vector<16x1xf32>
    %185 = arith.addf %181, %184 : vector<16x1xf32>
    %186 = math.rsqrt %185 : vector<16x1xf32>
    %187 = vector.broadcast %186 : vector<16x1xf32> to vector<16x32xf32>
    %188 = arith.mulf %183, %187 : vector<16x32xf32>
    %189 = vector.broadcast %168 : vector<1x32xf32> to vector<16x32xf32>
    %190 = arith.mulf %188, %189 : vector<16x32xf32>
    %191 = vector.broadcast %170 : vector<1x32xf32> to vector<16x32xf32>
    %192 = arith.addf %190, %191 : vector<16x32xf32>
    %193 = arith.truncf %192 : vector<16x32xf32> to vector<16x32xbf16>
    %c0_69 = arith.constant 0 : index
    %c0_70 = arith.constant 0 : index
    %c0_71 = arith.constant 0 : index
    %194 = vector.load %arg10[%c0_69, %c0_70, %c0_71] : memref<2x32x64xbf16, #tpu.memory_space<vmem>>, vector<1x32x64xbf16>
    %195 = vector.shape_cast %194 : vector<1x32x64xbf16> to vector<32x64xbf16>
    %cst_72 = arith.constant dense<0.000000e+00> : vector<16x64xf32>
    %196 = tpu.matmul %193, %195, %cst_72 {dimension_numbers = #tpu.dot_dimension_numbers<[1], [0], [0], [1], [0, 0, 1, 1], [], []>} : vector<16x32xbf16>, vector<32x64xbf16>, vector<16x64xf32> -> vector<16x64xf32>
    %c0_73 = arith.constant 0 : index
    %c0_74 = arith.constant 0 : index
    %c0_75 = arith.constant 0 : index
    %197 = vector.load %arg11[%c0_73, %c0_74, %c0_75] : memref<2x1x64xf32, #tpu.memory_space<vmem>>, vector<1x1x64xf32>
    %198 = vector.shape_cast %197 : vector<1x1x64xf32> to vector<1x64xf32>
    %199 = vector.broadcast %198 : vector<1x64xf32> to vector<16x64xf32>
    %200 = arith.addf %196, %199 : vector<16x64xf32>
    %cst_76 = arith.constant 5.000000e-01 : f32
    %201 = vector.broadcast %cst_76 : f32 to vector<16x64xf32>
    %202 = arith.mulf %201, %200 : vector<16x64xf32>
    %cst_77 = arith.constant 0.707106769 : f32
    %203 = vector.broadcast %cst_77 : f32 to vector<16x64xf32>
    %204 = arith.mulf %200, %203 : vector<16x64xf32>
    %205 = math.erf %204 : vector<16x64xf32>
    %cst_78 = arith.constant 1.000000e+00 : f32
    %206 = vector.broadcast %cst_78 : f32 to vector<16x64xf32>
    %207 = arith.addf %206, %205 : vector<16x64xf32>
    %208 = arith.mulf %202, %207 : vector<16x64xf32>
    %209 = arith.truncf %208 : vector<16x64xf32> to vector<16x64xbf16>
    %c0_79 = arith.constant 0 : index
    %c0_80 = arith.constant 0 : index
    %c0_81 = arith.constant 0 : index
    %210 = vector.load %arg12[%c0_79, %c0_80, %c0_81] : memref<2x64x32xbf16, #tpu.memory_space<vmem>>, vector<1x64x32xbf16>
    %211 = vector.shape_cast %210 : vector<1x64x32xbf16> to vector<64x32xbf16>
    %cst_82 = arith.constant dense<0.000000e+00> : vector<16x32xf32>
    %212 = tpu.matmul %209, %211, %cst_82 {dimension_numbers = #tpu.dot_dimension_numbers<[1], [0], [0], [1], [0, 0, 1, 1], [], []>} : vector<16x64xbf16>, vector<64x32xbf16>, vector<16x32xf32> -> vector<16x32xf32>
    %c0_83 = arith.constant 0 : index
    %c0_84 = arith.constant 0 : index
    %c0_85 = arith.constant 0 : index
    %213 = vector.load %arg13[%c0_83, %c0_84, %c0_85] : memref<2x1x32xf32, #tpu.memory_space<vmem>>, vector<1x1x32xf32>
    %214 = vector.shape_cast %213 : vector<1x1x32xf32> to vector<1x32xf32>
    %215 = vector.broadcast %214 : vector<1x32xf32> to vector<16x32xf32>
    %216 = arith.addf %212, %215 : vector<16x32xf32>
    %217 = arith.addf %216, %192 : vector<16x32xf32>
    %c0_86 = arith.constant 0 : index
    %c0_87 = arith.constant 0 : index
    %c0_88 = arith.constant 0 : index
    %218 = vector.load %arg14[%c0_86, %c0_87, %c0_88] : memref<2x1x32xf32, #tpu.memory_space<vmem>>, vector<1x1x32xf32>
    %219 = vector.shape_cast %218 : vector<1x1x32xf32> to vector<1x32xf32>
    %c0_89 = arith.constant 0 : index
    %c0_90 = arith.constant 0 : index
    %c0_91 = arith.constant 0 : index
    %220 = vector.load %arg15[%c0_89, %c0_90, %c0_91] : memref<2x1x32xf32, #tpu.memory_space<vmem>>, vector<1x1x32xf32>
    %221 = vector.shape_cast %220 : vector<1x1x32xf32> to vector<1x32xf32>
    %cst_92 = arith.constant dense<0.000000e+00> : vector<16xf32>
    %222 = vector.multi_reduction <add>, %217, %cst_92 [1] : vector<16x32xf32> to vector<16xf32>
    %223 = vector.shape_cast %222 : vector<16xf32> to vector<16x1xf32>
    %cst_93 = arith.constant 3.200000e+01 : f32
    %224 = vector.broadcast %cst_93 : f32 to vector<16x1xf32>
    %225 = arith.divf %223, %224 : vector<16x1xf32>
    %226 = vector.broadcast %225 : vector<16x1xf32> to vector<16x32xf32>
    %227 = arith.subf %217, %226 : vector<16x32xf32>
    %228 = arith.mulf %227, %227 : vector<16x32xf32>
    %cst_94 = arith.constant dense<0.000000e+00> : vector<16xf32>
    %229 = vector.multi_reduction <add>, %228, %cst_94 [1] : vector<16x32xf32> to vector<16xf32>
    %230 = vector.shape_cast %229 : vector<16xf32> to vector<16x1xf32>
    %cst_95 = arith.constant 3.200000e+01 : f32
    %231 = vector.broadcast %cst_95 : f32 to vector<16x1xf32>
    %232 = arith.divf %230, %231 : vector<16x1xf32>
    %233 = vector.broadcast %225 : vector<16x1xf32> to vector<16x32xf32>
    %234 = arith.subf %217, %233 : vector<16x32xf32>
    %cst_96 = arith.constant 9.99999996E-13 : f32
    %235 = vector.broadcast %cst_96 : f32 to vector<16x1xf32>
    %236 = arith.addf %232, %235 : vector<16x1xf32>
    %237 = math.rsqrt %236 : vector<16x1xf32>
    %238 = vector.broadcast %237 : vector<16x1xf32> to vector<16x32xf32>
    %239 = arith.mulf %234, %238 : vector<16x32xf32>
    %240 = vector.broadcast %219 : vector<1x32xf32> to vector<16x32xf32>
    %241 = arith.mulf %239, %240 : vector<16x32xf32>
    %242 = vector.broadcast %221 : vector<1x32xf32> to vector<16x32xf32>
    %243 = arith.addf %241, %242 : vector<16x32xf32>
    %244 = arith.truncf %243 : vector<16x32xf32> to vector<16x32xbf16>
    %c1_97 = arith.constant 1 : index
    %c0_98 = arith.constant 0 : index
    %c0_99 = arith.constant 0 : index
    %245 = vector.load %arg4[%c1_97, %c0_98, %c0_99] : memref<2x32x96xbf16, #tpu.memory_space<vmem>>, vector<1x32x96xbf16>
    %246 = vector.shape_cast %245 : vector<1x32x96xbf16> to vector<32x96xbf16>
    %cst_100 = arith.constant dense<0.000000e+00> : vector<16x96xf32>
    %247 = tpu.matmul %244, %246, %cst_100 {dimension_numbers = #tpu.dot_dimension_numbers<[1], [0], [0], [1], [0, 0, 1, 1], [], []>} : vector<16x32xbf16>, vector<32x96xbf16>, vector<16x96xf32> -> vector<16x96xf32>
    %c1_101 = arith.constant 1 : index
    %c0_102 = arith.constant 0 : index
    %c0_103 = arith.constant 0 : index
    %248 = vector.load %arg5[%c1_101, %c0_102, %c0_103] : memref<2x1x96xf32, #tpu.memory_space<vmem>>, vector<1x1x96xf32>
    %249 = vector.shape_cast %248 : vector<1x1x96xf32> to vector<1x96xf32>
    %250 = vector.broadcast %249 : vector<1x96xf32> to vector<16x96xf32>
    %251 = arith.addf %247, %250 : vector<16x96xf32>
    %252 = vector.extract_strided_slice %251 {offsets = [0, 0], sizes = [16, 8], strides = [1, 1]} : vector<16x96xf32> to vector<16x8xf32>
    %253 = vector.shape_cast %252 : vector<16x8xf32> to vector<2x8x8xf32>
    %254 = arith.truncf %253 : vector<2x8x8xf32> to vector<2x8x8xbf16>
    %255 = vector.extract_strided_slice %251 {offsets = [0, 32], sizes = [16, 8], strides = [1, 1]} : vector<16x96xf32> to vector<16x8xf32>
    %256 = vector.shape_cast %255 : vector<16x8xf32> to vector<2x8x8xf32>
    %257 = arith.truncf %256 : vector<2x8x8xf32> to vector<2x8x8xbf16>
    %258 = vector.extract_strided_slice %251 {offsets = [0, 64], sizes = [16, 8], strides = [1, 1]} : vector<16x96xf32> to vector<16x8xf32>
    %259 = vector.shape_cast %258 : vector<16x8xf32> to vector<2x8x8xf32>
    %260 = arith.truncf %259 : vector<2x8x8xf32> to vector<2x8x8xbf16>
    %cst_104 = arith.constant dense<0.000000e+00> : vector<2x8x8xf32>
    %261 = tpu.matmul %254, %257, %cst_104 {dimension_numbers = #tpu.dot_dimension_numbers<[2], [2], [1], [1], [0, 0, 0, 1, 1, 1], [0], [0]>} : vector<2x8x8xbf16>, vector<2x8x8xbf16>, vector<2x8x8xf32> -> vector<2x8x8xf32>
    %cst_105 = arith.constant 0.353553385 : f32
    %262 = vector.broadcast %cst_105 : f32 to vector<2x8x8xf32>
    %263 = arith.mulf %261, %262 : vector<2x8x8xf32>
    %264 = vector.broadcast %26 : vector<2x1x8xf32> to vector<2x8x8xf32>
    %265 = arith.addf %263, %264 : vector<2x8x8xf32>
    %cst_106 = arith.constant dense<0xFF800000> : vector<2x8xf32>
    %266 = vector.multi_reduction <maximumf>, %265, %cst_106 [2] : vector<2x8x8xf32> to vector<2x8xf32>
    %267 = vector.shape_cast %266 : vector<2x8xf32> to vector<2x8x1xf32>
    %268 = vector.broadcast %267 : vector<2x8x1xf32> to vector<2x8x8xf32>
    %269 = arith.subf %265, %268 : vector<2x8x8xf32>
    %270 = math.exp %269 : vector<2x8x8xf32>
    %cst_107 = arith.constant dense<0.000000e+00> : vector<2x8xf32>
    %271 = vector.multi_reduction <add>, %270, %cst_107 [2] : vector<2x8x8xf32> to vector<2x8xf32>
    %272 = vector.shape_cast %271 : vector<2x8xf32> to vector<2x8x1xf32>
    %273 = tpu.reciprocal %272 {approx = true} : vector<2x8x1xf32> -> vector<2x8x1xf32>
    %274 = vector.broadcast %273 : vector<2x8x1xf32> to vector<2x8x8xf32>
    %275 = arith.mulf %270, %274 : vector<2x8x8xf32>
    %276 = arith.truncf %275 : vector<2x8x8xf32> to vector<2x8x8xbf16>
    %cst_108 = arith.constant dense<0.000000e+00> : vector<2x8x8xf32>
    %277 = tpu.matmul %276, %260, %cst_108 {dimension_numbers = #tpu.dot_dimension_numbers<[2], [1], [1], [2], [0, 0, 0, 1, 1, 2], [0], [0]>} : vector<2x8x8xbf16>, vector<2x8x8xbf16>, vector<2x8x8xf32> -> vector<2x8x8xf32>
    %278 = vector.shape_cast %277 : vector<2x8x8xf32> to vector<16x8xf32>
    %279 = arith.truncf %278 : vector<16x8xf32> to vector<16x8xbf16>
    %c1_109 = arith.constant 1 : index
    %c0_110 = arith.constant 0 : index
    %c0_111 = arith.constant 0 : index
    %c0_112 = arith.constant 0 : index
    %280 = vector.load %arg6[%c1_109, %c0_110, %c0_111, %c0_112] : memref<2x4x8x32xbf16, #tpu.memory_space<vmem>>, vector<1x1x8x32xbf16>
    %281 = vector.shape_cast %280 : vector<1x1x8x32xbf16> to vector<8x32xbf16>
    %cst_113 = arith.constant dense<0.000000e+00> : vector<16x32xf32>
    %282 = tpu.matmul %279, %281, %cst_113 {dimension_numbers = #tpu.dot_dimension_numbers<[1], [0], [0], [1], [0, 0, 1, 1], [], []>} : vector<16x8xbf16>, vector<8x32xbf16>, vector<16x32xf32> -> vector<16x32xf32>
    %283 = vector.extract_strided_slice %251 {offsets = [0, 8], sizes = [16, 8], strides = [1, 1]} : vector<16x96xf32> to vector<16x8xf32>
    %284 = vector.shape_cast %283 : vector<16x8xf32> to vector<2x8x8xf32>
    %285 = arith.truncf %284 : vector<2x8x8xf32> to vector<2x8x8xbf16>
    %286 = vector.extract_strided_slice %251 {offsets = [0, 40], sizes = [16, 8], strides = [1, 1]} : vector<16x96xf32> to vector<16x8xf32>
    %287 = vector.shape_cast %286 : vector<16x8xf32> to vector<2x8x8xf32>
    %288 = arith.truncf %287 : vector<2x8x8xf32> to vector<2x8x8xbf16>
    %289 = vector.extract_strided_slice %251 {offsets = [0, 72], sizes = [16, 8], strides = [1, 1]} : vector<16x96xf32> to vector<16x8xf32>
    %290 = vector.shape_cast %289 : vector<16x8xf32> to vector<2x8x8xf32>
    %291 = arith.truncf %290 : vector<2x8x8xf32> to vector<2x8x8xbf16>
    %cst_114 = arith.constant dense<0.000000e+00> : vector<2x8x8xf32>
    %292 = tpu.matmul %285, %288, %cst_114 {dimension_numbers = #tpu.dot_dimension_numbers<[2], [2], [1], [1], [0, 0, 0, 1, 1, 1], [0], [0]>} : vector<2x8x8xbf16>, vector<2x8x8xbf16>, vector<2x8x8xf32> -> vector<2x8x8xf32>
    %cst_115 = arith.constant 0.353553385 : f32
    %293 = vector.broadcast %cst_115 : f32 to vector<2x8x8xf32>
    %294 = arith.mulf %292, %293 : vector<2x8x8xf32>
    %295 = vector.broadcast %26 : vector<2x1x8xf32> to vector<2x8x8xf32>
    %296 = arith.addf %294, %295 : vector<2x8x8xf32>
    %cst_116 = arith.constant dense<0xFF800000> : vector<2x8xf32>
    %297 = vector.multi_reduction <maximumf>, %296, %cst_116 [2] : vector<2x8x8xf32> to vector<2x8xf32>
    %298 = vector.shape_cast %297 : vector<2x8xf32> to vector<2x8x1xf32>
    %299 = vector.broadcast %298 : vector<2x8x1xf32> to vector<2x8x8xf32>
    %300 = arith.subf %296, %299 : vector<2x8x8xf32>
    %301 = math.exp %300 : vector<2x8x8xf32>
    %cst_117 = arith.constant dense<0.000000e+00> : vector<2x8xf32>
    %302 = vector.multi_reduction <add>, %301, %cst_117 [2] : vector<2x8x8xf32> to vector<2x8xf32>
    %303 = vector.shape_cast %302 : vector<2x8xf32> to vector<2x8x1xf32>
    %304 = tpu.reciprocal %303 {approx = true} : vector<2x8x1xf32> -> vector<2x8x1xf32>
    %305 = vector.broadcast %304 : vector<2x8x1xf32> to vector<2x8x8xf32>
    %306 = arith.mulf %301, %305 : vector<2x8x8xf32>
    %307 = arith.truncf %306 : vector<2x8x8xf32> to vector<2x8x8xbf16>
    %cst_118 = arith.constant dense<0.000000e+00> : vector<2x8x8xf32>
    %308 = tpu.matmul %307, %291, %cst_118 {dimension_numbers = #tpu.dot_dimension_numbers<[2], [1], [1], [2], [0, 0, 0, 1, 1, 2], [0], [0]>} : vector<2x8x8xbf16>, vector<2x8x8xbf16>, vector<2x8x8xf32> -> vector<2x8x8xf32>
    %309 = vector.shape_cast %308 : vector<2x8x8xf32> to vector<16x8xf32>
    %310 = arith.truncf %309 : vector<16x8xf32> to vector<16x8xbf16>
    %c1_119 = arith.constant 1 : index
    %c1_120 = arith.constant 1 : index
    %c0_121 = arith.constant 0 : index
    %c0_122 = arith.constant 0 : index
    %311 = vector.load %arg6[%c1_119, %c1_120, %c0_121, %c0_122] : memref<2x4x8x32xbf16, #tpu.memory_space<vmem>>, vector<1x1x8x32xbf16>
    %312 = vector.shape_cast %311 : vector<1x1x8x32xbf16> to vector<8x32xbf16>
    %cst_123 = arith.constant dense<0.000000e+00> : vector<16x32xf32>
    %313 = tpu.matmul %310, %312, %cst_123 {dimension_numbers = #tpu.dot_dimension_numbers<[1], [0], [0], [1], [0, 0, 1, 1], [], []>} : vector<16x8xbf16>, vector<8x32xbf16>, vector<16x32xf32> -> vector<16x32xf32>
    %314 = arith.addf %282, %313 : vector<16x32xf32>
    %315 = vector.extract_strided_slice %251 {offsets = [0, 16], sizes = [16, 8], strides = [1, 1]} : vector<16x96xf32> to vector<16x8xf32>
    %316 = vector.shape_cast %315 : vector<16x8xf32> to vector<2x8x8xf32>
    %317 = arith.truncf %316 : vector<2x8x8xf32> to vector<2x8x8xbf16>
    %318 = vector.extract_strided_slice %251 {offsets = [0, 48], sizes = [16, 8], strides = [1, 1]} : vector<16x96xf32> to vector<16x8xf32>
    %319 = vector.shape_cast %318 : vector<16x8xf32> to vector<2x8x8xf32>
    %320 = arith.truncf %319 : vector<2x8x8xf32> to vector<2x8x8xbf16>
    %321 = vector.extract_strided_slice %251 {offsets = [0, 80], sizes = [16, 8], strides = [1, 1]} : vector<16x96xf32> to vector<16x8xf32>
    %322 = vector.shape_cast %321 : vector<16x8xf32> to vector<2x8x8xf32>
    %323 = arith.truncf %322 : vector<2x8x8xf32> to vector<2x8x8xbf16>
    %cst_124 = arith.constant dense<0.000000e+00> : vector<2x8x8xf32>
    %324 = tpu.matmul %317, %320, %cst_124 {dimension_numbers = #tpu.dot_dimension_numbers<[2], [2], [1], [1], [0, 0, 0, 1, 1, 1], [0], [0]>} : vector<2x8x8xbf16>, vector<2x8x8xbf16>, vector<2x8x8xf32> -> vector<2x8x8xf32>
    %cst_125 = arith.constant 0.353553385 : f32
    %325 = vector.broadcast %cst_125 : f32 to vector<2x8x8xf32>
    %326 = arith.mulf %324, %325 : vector<2x8x8xf32>
    %327 = vector.broadcast %26 : vector<2x1x8xf32> to vector<2x8x8xf32>
    %328 = arith.addf %326, %327 : vector<2x8x8xf32>
    %cst_126 = arith.constant dense<0xFF800000> : vector<2x8xf32>
    %329 = vector.multi_reduction <maximumf>, %328, %cst_126 [2] : vector<2x8x8xf32> to vector<2x8xf32>
    %330 = vector.shape_cast %329 : vector<2x8xf32> to vector<2x8x1xf32>
    %331 = vector.broadcast %330 : vector<2x8x1xf32> to vector<2x8x8xf32>
    %332 = arith.subf %328, %331 : vector<2x8x8xf32>
    %333 = math.exp %332 : vector<2x8x8xf32>
    %cst_127 = arith.constant dense<0.000000e+00> : vector<2x8xf32>
    %334 = vector.multi_reduction <add>, %333, %cst_127 [2] : vector<2x8x8xf32> to vector<2x8xf32>
    %335 = vector.shape_cast %334 : vector<2x8xf32> to vector<2x8x1xf32>
    %336 = tpu.reciprocal %335 {approx = true} : vector<2x8x1xf32> -> vector<2x8x1xf32>
    %337 = vector.broadcast %336 : vector<2x8x1xf32> to vector<2x8x8xf32>
    %338 = arith.mulf %333, %337 : vector<2x8x8xf32>
    %339 = arith.truncf %338 : vector<2x8x8xf32> to vector<2x8x8xbf16>
    %cst_128 = arith.constant dense<0.000000e+00> : vector<2x8x8xf32>
    %340 = tpu.matmul %339, %323, %cst_128 {dimension_numbers = #tpu.dot_dimension_numbers<[2], [1], [1], [2], [0, 0, 0, 1, 1, 2], [0], [0]>} : vector<2x8x8xbf16>, vector<2x8x8xbf16>, vector<2x8x8xf32> -> vector<2x8x8xf32>
    %341 = vector.shape_cast %340 : vector<2x8x8xf32> to vector<16x8xf32>
    %342 = arith.truncf %341 : vector<16x8xf32> to vector<16x8xbf16>
    %c1_129 = arith.constant 1 : index
    %c2_130 = arith.constant 2 : index
    %c0_131 = arith.constant 0 : index
    %c0_132 = arith.constant 0 : index
    %343 = vector.load %arg6[%c1_129, %c2_130, %c0_131, %c0_132] : memref<2x4x8x32xbf16, #tpu.memory_space<vmem>>, vector<1x1x8x32xbf16>
    %344 = vector.shape_cast %343 : vector<1x1x8x32xbf16> to vector<8x32xbf16>
    %cst_133 = arith.constant dense<0.000000e+00> : vector<16x32xf32>
    %345 = tpu.matmul %342, %344, %cst_133 {dimension_numbers = #tpu.dot_dimension_numbers<[1], [0], [0], [1], [0, 0, 1, 1], [], []>} : vector<16x8xbf16>, vector<8x32xbf16>, vector<16x32xf32> -> vector<16x32xf32>
    %346 = arith.addf %314, %345 : vector<16x32xf32>
    %347 = vector.extract_strided_slice %251 {offsets = [0, 24], sizes = [16, 8], strides = [1, 1]} : vector<16x96xf32> to vector<16x8xf32>
    %348 = vector.shape_cast %347 : vector<16x8xf32> to vector<2x8x8xf32>
    %349 = arith.truncf %348 : vector<2x8x8xf32> to vector<2x8x8xbf16>
    %350 = vector.extract_strided_slice %251 {offsets = [0, 56], sizes = [16, 8], strides = [1, 1]} : vector<16x96xf32> to vector<16x8xf32>
    %351 = vector.shape_cast %350 : vector<16x8xf32> to vector<2x8x8xf32>
    %352 = arith.truncf %351 : vector<2x8x8xf32> to vector<2x8x8xbf16>
    %353 = vector.extract_strided_slice %251 {offsets = [0, 88], sizes = [16, 8], strides = [1, 1]} : vector<16x96xf32> to vector<16x8xf32>
    %354 = vector.shape_cast %353 : vector<16x8xf32> to vector<2x8x8xf32>
    %355 = arith.truncf %354 : vector<2x8x8xf32> to vector<2x8x8xbf16>
    %cst_134 = arith.constant dense<0.000000e+00> : vector<2x8x8xf32>
    %356 = tpu.matmul %349, %352, %cst_134 {dimension_numbers = #tpu.dot_dimension_numbers<[2], [2], [1], [1], [0, 0, 0, 1, 1, 1], [0], [0]>} : vector<2x8x8xbf16>, vector<2x8x8xbf16>, vector<2x8x8xf32> -> vector<2x8x8xf32>
    %cst_135 = arith.constant 0.353553385 : f32
    %357 = vector.broadcast %cst_135 : f32 to vector<2x8x8xf32>
    %358 = arith.mulf %356, %357 : vector<2x8x8xf32>
    %359 = vector.broadcast %26 : vector<2x1x8xf32> to vector<2x8x8xf32>
    %360 = arith.addf %358, %359 : vector<2x8x8xf32>
    %cst_136 = arith.constant dense<0xFF800000> : vector<2x8xf32>
    %361 = vector.multi_reduction <maximumf>, %360, %cst_136 [2] : vector<2x8x8xf32> to vector<2x8xf32>
    %362 = vector.shape_cast %361 : vector<2x8xf32> to vector<2x8x1xf32>
    %363 = vector.broadcast %362 : vector<2x8x1xf32> to vector<2x8x8xf32>
    %364 = arith.subf %360, %363 : vector<2x8x8xf32>
    %365 = math.exp %364 : vector<2x8x8xf32>
    %cst_137 = arith.constant dense<0.000000e+00> : vector<2x8xf32>
    %366 = vector.multi_reduction <add>, %365, %cst_137 [2] : vector<2x8x8xf32> to vector<2x8xf32>
    %367 = vector.shape_cast %366 : vector<2x8xf32> to vector<2x8x1xf32>
    %368 = tpu.reciprocal %367 {approx = true} : vector<2x8x1xf32> -> vector<2x8x1xf32>
    %369 = vector.broadcast %368 : vector<2x8x1xf32> to vector<2x8x8xf32>
    %370 = arith.mulf %365, %369 : vector<2x8x8xf32>
    %371 = arith.truncf %370 : vector<2x8x8xf32> to vector<2x8x8xbf16>
    %cst_138 = arith.constant dense<0.000000e+00> : vector<2x8x8xf32>
    %372 = tpu.matmul %371, %355, %cst_138 {dimension_numbers = #tpu.dot_dimension_numbers<[2], [1], [1], [2], [0, 0, 0, 1, 1, 2], [0], [0]>} : vector<2x8x8xbf16>, vector<2x8x8xbf16>, vector<2x8x8xf32> -> vector<2x8x8xf32>
    %373 = vector.shape_cast %372 : vector<2x8x8xf32> to vector<16x8xf32>
    %374 = arith.truncf %373 : vector<16x8xf32> to vector<16x8xbf16>
    %c1_139 = arith.constant 1 : index
    %c3_140 = arith.constant 3 : index
    %c0_141 = arith.constant 0 : index
    %c0_142 = arith.constant 0 : index
    %375 = vector.load %arg6[%c1_139, %c3_140, %c0_141, %c0_142] : memref<2x4x8x32xbf16, #tpu.memory_space<vmem>>, vector<1x1x8x32xbf16>
    %376 = vector.shape_cast %375 : vector<1x1x8x32xbf16> to vector<8x32xbf16>
    %cst_143 = arith.constant dense<0.000000e+00> : vector<16x32xf32>
    %377 = tpu.matmul %374, %376, %cst_143 {dimension_numbers = #tpu.dot_dimension_numbers<[1], [0], [0], [1], [0, 0, 1, 1], [], []>} : vector<16x8xbf16>, vector<8x32xbf16>, vector<16x32xf32> -> vector<16x32xf32>
    %378 = arith.addf %346, %377 : vector<16x32xf32>
    %c1_144 = arith.constant 1 : index
    %c0_145 = arith.constant 0 : index
    %c0_146 = arith.constant 0 : index
    %379 = vector.load %arg7[%c1_144, %c0_145, %c0_146] : memref<2x1x32xf32, #tpu.memory_space<vmem>>, vector<1x1x32xf32>
    %380 = vector.shape_cast %379 : vector<1x1x32xf32> to vector<1x32xf32>
    %381 = vector.broadcast %380 : vector<1x32xf32> to vector<16x32xf32>
    %382 = arith.addf %378, %381 : vector<16x32xf32>
    %383 = arith.addf %382, %243 : vector<16x32xf32>
    %c1_147 = arith.constant 1 : index
    %c0_148 = arith.constant 0 : index
    %c0_149 = arith.constant 0 : index
    %384 = vector.load %arg8[%c1_147, %c0_148, %c0_149] : memref<2x1x32xf32, #tpu.memory_space<vmem>>, vector<1x1x32xf32>
    %385 = vector.shape_cast %384 : vector<1x1x32xf32> to vector<1x32xf32>
    %c1_150 = arith.constant 1 : index
    %c0_151 = arith.constant 0 : index
    %c0_152 = arith.constant 0 : index
    %386 = vector.load %arg9[%c1_150, %c0_151, %c0_152] : memref<2x1x32xf32, #tpu.memory_space<vmem>>, vector<1x1x32xf32>
    %387 = vector.shape_cast %386 : vector<1x1x32xf32> to vector<1x32xf32>
    %cst_153 = arith.constant dense<0.000000e+00> : vector<16xf32>
    %388 = vector.multi_reduction <add>, %383, %cst_153 [1] : vector<16x32xf32> to vector<16xf32>
    %389 = vector.shape_cast %388 : vector<16xf32> to vector<16x1xf32>
    %cst_154 = arith.constant 3.200000e+01 : f32
    %390 = vector.broadcast %cst_154 : f32 to vector<16x1xf32>
    %391 = arith.divf %389, %390 : vector<16x1xf32>
    %392 = vector.broadcast %391 : vector<16x1xf32> to vector<16x32xf32>
    %393 = arith.subf %383, %392 : vector<16x32xf32>
    %394 = arith.mulf %393, %393 : vector<16x32xf32>
    %cst_155 = arith.constant dense<0.000000e+00> : vector<16xf32>
    %395 = vector.multi_reduction <add>, %394, %cst_155 [1] : vector<16x32xf32> to vector<16xf32>
    %396 = vector.shape_cast %395 : vector<16xf32> to vector<16x1xf32>
    %cst_156 = arith.constant 3.200000e+01 : f32
    %397 = vector.broadcast %cst_156 : f32 to vector<16x1xf32>
    %398 = arith.divf %396, %397 : vector<16x1xf32>
    %399 = vector.broadcast %391 : vector<16x1xf32> to vector<16x32xf32>
    %400 = arith.subf %383, %399 : vector<16x32xf32>
    %cst_157 = arith.constant 9.99999996E-13 : f32
    %401 = vector.broadcast %cst_157 : f32 to vector<16x1xf32>
    %402 = arith.addf %398, %401 : vector<16x1xf32>
    %403 = math.rsqrt %402 : vector<16x1xf32>
    %404 = vector.broadcast %403 : vector<16x1xf32> to vector<16x32xf32>
    %405 = arith.mulf %400, %404 : vector<16x32xf32>
    %406 = vector.broadcast %385 : vector<1x32xf32> to vector<16x32xf32>
    %407 = arith.mulf %405, %406 : vector<16x32xf32>
    %408 = vector.broadcast %387 : vector<1x32xf32> to vector<16x32xf32>
    %409 = arith.addf %407, %408 : vector<16x32xf32>
    %410 = arith.truncf %409 : vector<16x32xf32> to vector<16x32xbf16>
    %c1_158 = arith.constant 1 : index
    %c0_159 = arith.constant 0 : index
    %c0_160 = arith.constant 0 : index
    %411 = vector.load %arg10[%c1_158, %c0_159, %c0_160] : memref<2x32x64xbf16, #tpu.memory_space<vmem>>, vector<1x32x64xbf16>
    %412 = vector.shape_cast %411 : vector<1x32x64xbf16> to vector<32x64xbf16>
    %cst_161 = arith.constant dense<0.000000e+00> : vector<16x64xf32>
    %413 = tpu.matmul %410, %412, %cst_161 {dimension_numbers = #tpu.dot_dimension_numbers<[1], [0], [0], [1], [0, 0, 1, 1], [], []>} : vector<16x32xbf16>, vector<32x64xbf16>, vector<16x64xf32> -> vector<16x64xf32>
    %c1_162 = arith.constant 1 : index
    %c0_163 = arith.constant 0 : index
    %c0_164 = arith.constant 0 : index
    %414 = vector.load %arg11[%c1_162, %c0_163, %c0_164] : memref<2x1x64xf32, #tpu.memory_space<vmem>>, vector<1x1x64xf32>
    %415 = vector.shape_cast %414 : vector<1x1x64xf32> to vector<1x64xf32>
    %416 = vector.broadcast %415 : vector<1x64xf32> to vector<16x64xf32>
    %417 = arith.addf %413, %416 : vector<16x64xf32>
    %cst_165 = arith.constant 5.000000e-01 : f32
    %418 = vector.broadcast %cst_165 : f32 to vector<16x64xf32>
    %419 = arith.mulf %418, %417 : vector<16x64xf32>
    %cst_166 = arith.constant 0.707106769 : f32
    %420 = vector.broadcast %cst_166 : f32 to vector<16x64xf32>
    %421 = arith.mulf %417, %420 : vector<16x64xf32>
    %422 = math.erf %421 : vector<16x64xf32>
    %cst_167 = arith.constant 1.000000e+00 : f32
    %423 = vector.broadcast %cst_167 : f32 to vector<16x64xf32>
    %424 = arith.addf %423, %422 : vector<16x64xf32>
    %425 = arith.mulf %419, %424 : vector<16x64xf32>
    %426 = arith.truncf %425 : vector<16x64xf32> to vector<16x64xbf16>
    %c1_168 = arith.constant 1 : index
    %c0_169 = arith.constant 0 : index
    %c0_170 = arith.constant 0 : index
    %427 = vector.load %arg12[%c1_168, %c0_169, %c0_170] : memref<2x64x32xbf16, #tpu.memory_space<vmem>>, vector<1x64x32xbf16>
    %428 = vector.shape_cast %427 : vector<1x64x32xbf16> to vector<64x32xbf16>
    %cst_171 = arith.constant dense<0.000000e+00> : vector<16x32xf32>
    %429 = tpu.matmul %426, %428, %cst_171 {dimension_numbers = #tpu.dot_dimension_numbers<[1], [0], [0], [1], [0, 0, 1, 1], [], []>} : vector<16x64xbf16>, vector<64x32xbf16>, vector<16x32xf32> -> vector<16x32xf32>
    %c1_172 = arith.constant 1 : index
    %c0_173 = arith.constant 0 : index
    %c0_174 = arith.constant 0 : index
    %430 = vector.load %arg13[%c1_172, %c0_173, %c0_174] : memref<2x1x32xf32, #tpu.memory_space<vmem>>, vector<1x1x32xf32>
    %431 = vector.shape_cast %430 : vector<1x1x32xf32> to vector<1x32xf32>
    %432 = vector.broadcast %431 : vector<1x32xf32> to vector<16x32xf32>
    %433 = arith.addf %429, %432 : vector<16x32xf32>
    %434 = arith.addf %433, %409 : vector<16x32xf32>
    %c1_175 = arith.constant 1 : index
    %c0_176 = arith.constant 0 : index
    %c0_177 = arith.constant 0 : index
    %435 = vector.load %arg14[%c1_175, %c0_176, %c0_177] : memref<2x1x32xf32, #tpu.memory_space<vmem>>, vector<1x1x32xf32>
    %436 = vector.shape_cast %435 : vector<1x1x32xf32> to vector<1x32xf32>
    %c1_178 = arith.constant 1 : index
    %c0_179 = arith.constant 0 : index
    %c0_180 = arith.constant 0 : index
    %437 = vector.load %arg15[%c1_178, %c0_179, %c0_180] : memref<2x1x32xf32, #tpu.memory_space<vmem>>, vector<1x1x32xf32>
    %438 = vector.shape_cast %437 : vector<1x1x32xf32> to vector<1x32xf32>
    %cst_181 = arith.constant dense<0.000000e+00> : vector<16xf32>
    %439 = vector.multi_reduction <add>, %434, %cst_181 [1] : vector<16x32xf32> to vector<16xf32>
    %440 = vector.shape_cast %439 : vector<16xf32> to vector<16x1xf32>
    %cst_182 = arith.constant 3.200000e+01 : f32
    %441 = vector.broadcast %cst_182 : f32 to vector<16x1xf32>
    %442 = arith.divf %440, %441 : vector<16x1xf32>
    %443 = vector.broadcast %442 : vector<16x1xf32> to vector<16x32xf32>
    %444 = arith.subf %434, %443 : vector<16x32xf32>
    %445 = arith.mulf %444, %444 : vector<16x32xf32>
    %cst_183 = arith.constant dense<0.000000e+00> : vector<16xf32>
    %446 = vector.multi_reduction <add>, %445, %cst_183 [1] : vector<16x32xf32> to vector<16xf32>
    %447 = vector.shape_cast %446 : vector<16xf32> to vector<16x1xf32>
    %cst_184 = arith.constant 3.200000e+01 : f32
    %448 = vector.broadcast %cst_184 : f32 to vector<16x1xf32>
    %449 = arith.divf %447, %448 : vector<16x1xf32>
    %450 = vector.broadcast %442 : vector<16x1xf32> to vector<16x32xf32>
    %451 = arith.subf %434, %450 : vector<16x32xf32>
    %cst_185 = arith.constant 9.99999996E-13 : f32
    %452 = vector.broadcast %cst_185 : f32 to vector<16x1xf32>
    %453 = arith.addf %449, %452 : vector<16x1xf32>
    %454 = math.rsqrt %453 : vector<16x1xf32>
    %455 = vector.broadcast %454 : vector<16x1xf32> to vector<16x32xf32>
    %456 = arith.mulf %451, %455 : vector<16x32xf32>
    %457 = vector.broadcast %436 : vector<1x32xf32> to vector<16x32xf32>
    %458 = arith.mulf %456, %457 : vector<16x32xf32>
    %459 = vector.broadcast %438 : vector<1x32xf32> to vector<16x32xf32>
    %460 = arith.addf %458, %459 : vector<16x32xf32>
    %461 = vector.shape_cast %460 : vector<16x32xf32> to vector<2x8x32xf32>
    %462 = vector.extract_strided_slice %461 {offsets = [0, 0, 0], sizes = [2, 1, 32], strides = [1, 1, 1]} : vector<2x8x32xf32> to vector<2x1x32xf32>
    %463 = vector.shape_cast %462 : vector<2x1x32xf32> to vector<2x32xf32>
    %464 = arith.truncf %463 : vector<2x32xf32> to vector<2x32xbf16>
    %c0_186 = arith.constant 0 : index
    %c0_187 = arith.constant 0 : index
    %465 = vector.load %arg16[%c0_186, %c0_187] : memref<32x32xbf16, #tpu.memory_space<vmem>>, vector<32x32xbf16>
    %cst_188 = arith.constant dense<0.000000e+00> : vector<2x32xf32>
    %466 = tpu.matmul %464, %465, %cst_188 {dimension_numbers = #tpu.dot_dimension_numbers<[1], [0], [0], [1], [0, 0, 1, 1], [], []>} : vector<2x32xbf16>, vector<32x32xbf16>, vector<2x32xf32> -> vector<2x32xf32>
    %c0_189 = arith.constant 0 : index
    %c0_190 = arith.constant 0 : index
    %467 = vector.load %arg17[%c0_189, %c0_190] : memref<1x32xf32, #tpu.memory_space<vmem>>, vector<1x32xf32>
    %468 = vector.broadcast %467 : vector<1x32xf32> to vector<2x32xf32>
    %469 = arith.addf %466, %468 : vector<2x32xf32>
    %470 = math.tanh %469 : vector<2x32xf32>
    %471 = arith.truncf %470 : vector<2x32xf32> to vector<2x32xbf16>
    %c0_191 = arith.constant 0 : index
    %c0_192 = arith.constant 0 : index
    %472 = vector.load %arg18[%c0_191, %c0_192] : memref<32x2xbf16, #tpu.memory_space<vmem>>, vector<32x2xbf16>
    %cst_193 = arith.constant dense<0.000000e+00> : vector<2x2xf32>
    %473 = tpu.matmul %471, %472, %cst_193 {dimension_numbers = #tpu.dot_dimension_numbers<[1], [0], [0], [1], [0, 0, 1, 1], [], []>} : vector<2x32xbf16>, vector<32x2xbf16>, vector<2x2xf32> -> vector<2x2xf32>
    %c0_194 = arith.constant 0 : index
    %c0_195 = arith.constant 0 : index
    %474 = vector.load %arg19[%c0_194, %c0_195] : memref<1x2xf32, #tpu.memory_space<vmem>>, vector<1x2xf32>
    %475 = vector.broadcast %474 : vector<1x2xf32> to vector<2x2xf32>
    %476 = arith.addf %473, %475 : vector<2x2xf32>
    %c0_196 = arith.constant 0 : index
    %c0_197 = arith.constant 0 : index
    %477 = vector.load %arg20[%c0_196, %c0_197] : memref<2x2xf32, #tpu.memory_space<vmem>>, vector<2x2xf32>
    tpu.vector_store %arg20[%c0_196, %c0_197], %476 {strides = array<i32>} : memref<2x2xf32, #tpu.memory_space<vmem>>, vector<2x2xf32>,
    return
  }
}

</mosaic_0001>

<bundles_post_ra>
// kernel: fwd.1
= control target key start
LH: loop header
LB: loop body
LE: loop exit
PB: predicated region body
PF: predicated region fallthrough
CT: control target
= control target key end

     0   :  { %s4627_s0 = inlined_call_operand.vmem [shape: f32[16,32], index: 0, kind: input, shape index: {}]   ;;  %s4628_s1 = inlined_call_operand.vmem [shape: f32[2,8], index: 1, kind: input, shape index: {}]   ;;  %s4629_s2 = inlined_call_operand.vmem [shape: f32[1,32], index: 2, kind: input, shape index: {}]   ;;  %s4630_s3 = inlined_call_operand.vmem [shape: f32[1,32], index: 3, kind: input, shape index: {}]   ;;  %s4631_s4 = inlined_call_operand.vmem [shape: bf16[2,32,96], index: 4, kind: input, shape index: {}]   ;;  %s4632_s5 = inlined_call_operand.vmem [shape: f32[2,1,96], index: 5, kind: input, shape index: {}]   ;;  %s4633_s6 = inlined_call_operand.vmem [shape: bf16[2,4,8,32], index: 6, kind: input, shape index: {}]   ;;  %s4634_s7 = inlined_call_operand.vmem [shape: f32[2,1,32], index: 7, kind: input, shape index: {}]   ;;  %s4635_s8 = inlined_call_operand.vmem [shape: f32[2,1,32], index: 8, kind: input, shape index: {}]   ;;  %s4636_s9 = inlined_call_operand.vmem [shape: f32[2,1,32], index: 9, kind: input, shape index: {}]   ;;  %s4637_s10 = inlined_call_operand.vmem [shape: bf16[2,32,64], index: 10, kind: input, shape index: {}]   ;;  %s4638_s11 = inlined_call_operand.vmem [shape: f32[2,1,64], index: 11, kind: input, shape index: {}]   ;;  %s4639_s12 = inlined_call_operand.vmem [shape: bf16[2,64,32], index: 12, kind: input, shape index: {}]   ;;  %s4640_s13 = inlined_call_operand.vmem [shape: f32[2,1,32], index: 13, kind: input, shape index: {}]   ;;  %s4641_s14 = inlined_call_operand.vmem [shape: f32[2,1,32], index: 14, kind: input, shape index: {}]   ;;  %s4642_s15 = inlined_call_operand.vmem [shape: f32[2,1,32], index: 15, kind: input, shape index: {}]   ;;  %s4643_s16 = inlined_call_operand.vmem [shape: bf16[32,32], index: 16, kind: input, shape index: {}]   ;;  %s4644_s17 = inlined_call_operand.vmem [shape: f32[1,32], index: 17, kind: input, shape index: {}]   ;;  %s4645_s18 = inlined_call_operand.vmem [shape: bf16[32,2], index: 18, kind: input, shape index: {}]   ;;  %s4646_s19 = inlined_call_operand.vmem [shape: f32[1,2], index: 19, kind: input, shape index: {}]   ;;  %s4647_s20 = inlined_call_operand.hbm [shape: f32[2,2], index: 20, kind: output, shape index: {}]  }
   0x1   :  { %4658 = sst [smem:[#allocation5_spill]] %s4627_s0 }
   0x2   :  { %4659 = sst [smem:[#allocation6_spill]] %s4628_s1 }
   0x3   :  { %4660 = sst [smem:[#allocation7_spill]] %s4629_s2 }
   0x4   :  { %4661 = sst [smem:[#allocation8_spill]] %s4630_s3 }
   0x5   :  { %4662 = sst [smem:[#allocation9_spill]] %s4631_s4 }
   0x6   :  { %s4663_s23 = sld [smem:[#allocation5_spill]]  ;;  %vm71_vm0 = vcmask 261120  }
   0xc   :  { %v67_v0 = vld [vmem:[%s4663_s23] sm:$0xff]  ;;  %v68_v1 = vld [vmem:[%s4663_s23 + $0x8] sm:$0xff] }
   0xd   :  { %v72_v2 = vsel %vm71_vm0, %v67_v0, 0.0  ;;  %v75_v3 = vsel %vm71_vm0, %v68_v1, 0.0 }
   0xe   :  { %73 = vadd.xlane.f32.xlu0 %v72_v2 }
  0x12   :  { %76 = vadd.xlane.f32.xlu0 %v75_v3 }
  0x13   :  { %25 = vsyncpa [#allocation3], 0  ;;  %s4664_s26 = sld [smem:[#allocation9_spill]]  ;;  %v3877_v15 = vmov 0.0   ;;  %vm3878_vm1 = vmmov 0   ;;  %s4665_s30 = sld [smem:[#allocation7_spill]]  ;;  %v128_v49 = vlaneseq }
  0x14   :  { %3412 = vmatprep.subr.bf16.mxu0 %v3877_v15  ;;  %3420 = vmatprep.subr.bf16.mxu1 %v3877_v15  ;;  %s4666_s1 = sld [smem:[#allocation8_spill]]  ;;  %v3187_v34 = vld [vmem:[%s4632_s5] ss:$0 sm:$0xff]  ;;  %s3879_s24 = smov 96   ;;  %vm212_vm2 = vcmask 64512   ;;  %vm351_vm3 = vcmask 1043456  }
  0x15   :  { %3416 = vmatprep.mubr.msk.bf16.mxu0 %vm3878_vm1, %v3877_v15  ;;  %3422 = vmatprep.mubr.msk.bf16.mxu1 %vm3878_vm1, %v3877_v15  ;;  %v3880_v47 = vmov 1966171168   ;;  %v129_v51 = vshrl.u32 %v128_v49, 7  ;;  %s4667_s3 = sld [smem:[#allocation6_spill]]  ;;  %s3881_s27 = smov 64   ;;  %vm1491_vm4 = vcmask 523264  }
  0x16   :  { %v126_v48 = vunpack.c.l.s4 %v3880_v47  ;;  %s3882_s28 = smov 88   ;;  %s3883_s4 = smov 120   ;;  %vm3042_vm5 = vcmask 1041409   ;;  %vm3168_vm6 = vcmask 9216  }
  0x17   :  { %v312_v56 = vsub.s32 0, %v129_v51  ;;  %s3884_s29 = smov 56   ;;  %s3886_s0 = smov 112  }
  0x18   :  { %v127_v50 = vunpack.c.0.s8 %v126_v48  ;;  %s4656_s2 = smov 48   ;;  %s4654_s25 = smov 72  }
  0x19   :  { %v3739_v14 = vld [vmem:[%s4664_s26] sm:$0xff]   ;;  %v3740_v16 = vld [vmem:[%s4664_s26 + $0x8] sm:$0xff]   ;;  %s4650_s22 = smov 40   ;;  %s4671_s21 = smov 40  }
  0x1a   :  { %3413 = vmatpush3.bf16.msra.mxu0 %v3739_v14  ;;  %v3184_v25 = vld [vmem:[%s4665_s30] ss:$0 sm:$0xff]  ;;  %v130_v53 = vsub.s32 %v127_v50, %v129_v51  ;;  %s3885_s30 = smov 80  }
  0x1b   :  { %3414 = vmatprep.subr.bf16.mxu0 %v3877_v15  ;;  %v3185_v29 = vld [vmem:[%s4666_s1] ss:$0 sm:$0xff] }
  0x1c   :  { %v3186_v52 = vld.sshfl [vmem:[%s4667_s3] sm:$0x11 pattern:$0x75316420]  ;;  %s4652_s3 = smov 104  }
  0x1d   :  { %v124_v54 = vcombine.high %v3186_v52, %v3186_v52  ;;  %v131_v55 = vrot.slane %v3186_v52, %v130_v53 }
  0x1e   :  { %3415 = vmatpush3.bf16.msra.mxu0 %v3740_v16 }
  0x1f   :  { %3426 = vmatprep.subr.bf16.mxu0 %v3877_v15  ;;  %v138_v57 = vrot.slane %v124_v54, %v130_v53  ;;  %v4062_v58 = vrot.slane %v131_v55, %v312_v56 }
  0x21   :  { %v4064_v62 = vrot.slane %v138_v57, %v312_v56 }
  0x9b   :  { %v74_v4 = vpop.xlane.xlu0 %73 }
  0x9c   :  { %v79_v5 = vmul.f32 0.03125, %v74_v4 }
  0x9e   :  { %v81_v6 = vsub.f32 %v67_v0, %v79_v5 }
  0x9f   :  { %v77_v7 = vpop.xlane.xlu0 %76 }
  0xa0   :  { %v80_v8 = vmul.f32 0.03125, %v77_v7  ;;  %v83_v9 = vmul.f32 %v81_v6, %v81_v6 }
  0xa2   :  { %v82_v10 = vsub.f32 %v68_v1, %v80_v8  ;;  %v85_v11 = vsel %vm71_vm0, %v83_v9, 0.0 }
  0xa3   :  { %86 = vadd.xlane.f32.xlu1 %v85_v11 }
  0xa4   :  { %v84_v12 = vmul.f32 %v82_v10, %v82_v10 }
  0xa6   :  { %v88_v13 = vsel %vm71_vm0, %v84_v12, 0.0 }
  0xa7   :  { %89 = vadd.xlane.f32.xlu1 %v88_v13 }
 0x130   :  { %v87_v17 = vpop.xlane.xlu1 %86 }
 0x131   :  { %v91_v18 = vmul.f32 0.03125, %v87_v17 }
 0x133   :  { %v93_v19 = vadd.f32 1e-12, %v91_v18 }
 0x134   :  { %v90_v20 = vpop.xlane.xlu1 %89 }
 0x135   :  { %3759 = vrsqrt.f32 %v93_v19  ;;  %v92_v21 = vmul.f32 0.03125, %v90_v20 }
 0x137   :  { %v94_v22 = vadd.f32 1e-12, %v92_v21 }
 0x139   :  { %3761 = vrsqrt.f32 %v94_v22 }
 0x13f   :  { %v3760_v23 = vpop.eup %3759 }
 0x140   :  { %v97_v24 = vmul.f32 %v3760_v23, %v81_v6 }
 0x142   :  { %v105_v28 = vmul.f32 %v3184_v25, %v97_v24 }
 0x143   :  { %v3762_v26 = vpop.eup %3761 }
 0x144   :  { %v98_v27 = vmul.f32 %v3762_v26, %v82_v10  ;;  %v4027_v31 = vadd.f32 %v3185_v29, %v105_v28 }
 0x146   :  { %v106_v30 = vmul.f32 %v3184_v25, %v98_v27 }
 0x148   :  { %v4029_v32 = vadd.f32 %v3185_v29, %v106_v30 }
 0x14a   :  { %v139_v33 = vpack.c.bf16 %v4029_v32, %v4027_v31 }
 0x14c   :  { %3417 = vmatmul.mubr.msk.bf16.vlgmr.msra.gmra.mrb[0].mxu0 %vm71_vm0, %v139_v33 }
 0x14d   :  { %3428 = vmatprep.mubr.msk.bf16.mxu0 %vm3878_vm1, %v3877_v15 }
 0x21f   :  { %v200_v35 = vpop.f32.mrb[0].mxu0 }
 0x220   :  { %v201_v36 = vadd.f32 %v3187_v34, %v200_v35  ;;  %v3418_v37 = vpop.f32.mrb[1].mxu0 }
 0x221   :  { %v203_v38 = vpop.f32.mrb[2].mxu0 }
 0x222   :  { %v4039_v39 = vpack.c.bf16 %v201_v36, %v201_v36  ;;  %v204_v40 = vadd.f32 %v3187_v34, %v203_v38  ;;  %v3419_v41 = vpop.f32.mrb[3].mxu0 }
 0x224   :  { %v4041_v42 = vpack.c.bf16 %v204_v40, %v204_v40  ;;  %210 = vrot.lane.b32.xlu0 %v4039_v39, %s3879_s24 }
 0x226   :  { %260 = vrot.lane.b32.xlu1 %v4041_v42, %s3879_s24 }
 0x296   :  { %v211_v43 = vpop.permute.xlu0 %210 }
 0x297   :  { %v217_v44 = vsel %vm212_vm2, %v211_v43, 0 }
 0x298   :  { %3421 = vmatpush3.bf16.xpose.msra.mxu1 %v217_v44  ;;  %v261_v45 = vpop.permute.xlu1 %260 }
 0x299   :  { %v266_v46 = vsel %vm212_vm2, %v261_v45, 0  ;;  %3432 = vmatprep.subr.bf16.mxu1 %v3877_v15 }
 0x29a   :  { %3427 = vmatpush3.bf16.xpose.msra.mxu0 %v266_v46 }
 0x29b   :  { %3438 = vmatprep.subr.bf16.mxu0 %v3877_v15 }
 0x29f   :  { %3423 = vmatmul.mubr.msk.bf16.vlgmr.msra.gmra.mrb[0].mxu1 %vm212_vm2, %v4039_v39 }
 0x2a0   :  { %3434 = vmatprep.mubr.msk.bf16.mxu1 %vm3878_vm1, %v3877_v15 }
 0x2a1   :  { %3429 = vmatmul.mubr.msk.bf16.vlgmr.msra.gmra.mrb[4].mxu0 %vm212_vm2, %v4041_v42 }
 0x2a2   :  { %3440 = vmatprep.mubr.msk.bf16.mxu0 %vm3878_vm1, %v3877_v15 }
 0x372   :  { %v253_v59 = vpop.f32.mrb[0].mxu1 }
 0x373   :  { %v308_v60 = vmul.f32 0.35355338, %v253_v59  ;;  %v3424_v61 = vpop.f32.mrb[1].mxu1 }
 0x374   :  { %v256_v63 = vpop.f32.mrb[2].mxu1  ;;  %v302_v0 = vpop.f32.mrb[4].mxu0 }
 0x375   :  { %v309_v1 = vmul.f32 0.35355338, %v302_v0  ;;  %v3425_v2 = vpop.f32.mrb[3].mxu1  ;;  %v3430_v3 = vpop.f32.mrb[5].mxu0  ;;  %v320_v4 = vadd.f32 %v4062_v58, %v308_v60 }
 0x376   :  { %v305_v5 = vpop.f32.mrb[6].mxu0 }
 0x377   :  { %v3431_v6 = vpop.f32.mrb[7].mxu0  ;;  %v322_v7 = vsel %vm212_vm2, %v320_v4, -inf  ;;  %v321_v8 = vadd.f32 %v4064_v62, %v309_v1 }
 0x378   :  { %323 = vmax.xlane.f32.xlu1 %v322_v7 }
 0x379   :  { %v325_v9 = vsel %vm212_vm2, %v321_v8, -inf }
 0x37a   :  { %326 = vmax.xlane.f32.xlu0 %v325_v9 }
 0x389   :  { %395 = vrot.lane.b32.xlu1 %v4041_v42, %s3881_s27 }
 0x38d   :  { %447 = vrot.lane.b32.xlu1 %v4039_v39, %s3882_s28 }
 0x405   :  { %v324_v10 = vpop.xlane.xlu1 %323 }
 0x406   :  { %v328_v11 = vsub.f32 %v320_v4, %v324_v10 }
 0x407   :  { %v327_v12 = vpop.xlane.xlu0 %326 }
 0x408   :  { %v330_v13 = vmul.f32 1.442695, %v328_v11  ;;  %v329_v14 = vsub.f32 %v321_v8, %v327_v12 }
 0x409   :  { %v396_v16 = vpop.permute.xlu1 %395 }
 0x40a   :  { %3763 = vpow2.f32 %v330_v13  ;;  %v332_v17 = vmul.f32 1.442695, %v329_v14  ;;  %v401_v18 = vsel %vm351_vm3, %v396_v16, 0 }
 0x40b   :  { %3439 = vmatpush3.bf16.msra.mxu0 %v401_v18 }
 0x40c   :  { %3765 = vpow2.f32 %v332_v17  ;;  %3450 = vmatprep.subr.bf16.mxu0 %v3877_v15 }
 0x40d   :  { %v448_v23 = vpop.permute.xlu1 %447 }
 0x40e   :  { %v453_v36 = vsel %vm212_vm2, %v448_v23, 0 }
 0x414   :  { %v3764_v19 = vpop.eup %3763 }
 0x415   :  { %v334_v20 = vsel %vm212_vm2, %v3764_v19, 0.0 }
 0x416   :  { %v3766_v21 = vpop.eup %3765  ;;  %335 = vadd.xlane.f32.xlu0 %v334_v20 }
 0x417   :  { %v337_v22 = vsel %vm212_vm2, %v3766_v21, 0.0 }
 0x418   :  { %338 = vadd.xlane.f32.xlu1 %v337_v22  ;;  %v3199_v22 = vld [vmem:[%s4633_s6 + $0x4] sm:$0xf] }
 0x429   :  { %497 = vrot.lane.b32.xlu1 %v4041_v42, %s3882_s28 }
 0x42c   :  { %346 = vrot.lane.b32.xlu0 %v4039_v39, %s3881_s27 }
 0x42d   :  { %495 = vrot.lane.b32.xlu1 %v4041_v42, %s3883_s4 }
 0x430   :  { %445 = vrot.lane.b32.xlu0 %v4039_v39, %s3883_s4 }
 0x4a3   :  { %v336_v24 = vpop.xlane.xlu0 %335 }
 0x4a4   :  { %3767 = vrcp.f32 %v336_v24 }
 0x4a5   :  { %v339_v25 = vpop.xlane.xlu1 %338 }
 0x4a6   :  { %3769 = vrcp.f32 %v339_v25  ;;  %v676_v25 = vsel %vm351_vm3, %v3199_v22, 0 }
 0x4a7   :  { %v347_v26 = vpop.permute.xlu0 %346 }
 0x4a8   :  { %v353_v27 = vsel %vm351_vm3, %v347_v26, 0 }
 0x4a9   :  { %3433 = vmatpush3.bf16.msra.mxu1 %v353_v27  ;;  %v498_v35 = vpop.permute.xlu1 %497  ;;  %v444_v27 = vld [vmem:[%s4633_s6] sm:$0xf] }
 0x4aa   :  { %3444 = vmatprep.subr.bf16.mxu1 %v3877_v15  ;;  %v503_v38 = vsel %vm212_vm2, %v498_v35, 0 }
 0x4ab   :  { %v446_v40 = vpop.permute.xlu0 %445 }
 0x4ad   :  { %v496_v41 = vpop.permute.xlu1 %495 }
 0x4ae   :  { %v3768_v28 = vpop.eup %3767 }
 0x4af   :  { %v342_v29 = vmul.f32 %v3768_v28, %v3764_v19 }
 0x4b0   :  { %v3770_v30 = vpop.eup %3769 }
 0x4b1   :  { %v343_v33 = vmul.f32 %v3770_v30, %v3766_v21  ;;  %v344_v34 = vpack.c.bf16 %v342_v29, %v342_v29  ;;  %v723_v30 = vsel %vm351_vm3, %v444_v27, 0 }
 0x4b3   :  { %3435 = vmatmul.mubr.msk.bf16.vlgmr.msra.gmra.mrb[4].mxu1 %vm212_vm2, %v344_v34  ;;  %v345_v37 = vpack.c.bf16 %v343_v33, %v343_v33 }
 0x4b4   :  { %3445 = vmatpush3.bf16.xpose.msra.mxu1 %v453_v36  ;;  %3446 = vmatprep.mubr.msk.bf16.mxu1 %vm3878_vm1, %v3877_v15 }
 0x4b5   :  { %3441 = vmatmul.mubr.msk.bf16.vlgmr.msra.gmra.mrb[8].mxu0 %vm212_vm2, %v345_v37  ;;  %3456 = vmatprep.subr.bf16.mxu1 %v3877_v15 }
 0x4b6   :  { %3451 = vmatpush3.bf16.xpose.msra.mxu0 %v503_v38  ;;  %3452 = vmatprep.mubr.msk.bf16.mxu0 %vm3878_vm1, %v3877_v15 }
 0x4b7   :  { %3462 = vmatprep.subr.bf16.mxu0 %v3877_v15 }
 0x4bb   :  { %3447 = vmatmul.mubr.msk.bf16.vlgmr.msra.gmra.mrb[8].mxu1 %vm212_vm2, %v446_v40 }
 0x4bc   :  { %3458 = vmatprep.mubr.msk.bf16.mxu1 %vm3878_vm1, %v3877_v15 }
 0x4bd   :  { %3453 = vmatmul.mubr.msk.bf16.vlgmr.msra.gmra.mrb[12].mxu0 %vm212_vm2, %v496_v41 }
 0x4be   :  { %3464 = vmatprep.mubr.msk.bf16.mxu0 %vm3878_vm1, %v3877_v15 }
 0x586   :  { %v4104_v43 = vpop.f32.mrb[4].mxu1 }
 0x587   :  { %v3436_v44 = vpop.f32.mrb[5].mxu1 }
 0x588   :  { %v392_v45 = vpop.f32.mrb[6].mxu1  ;;  %v4106_v46 = vpop.f32.mrb[8].mxu0 }
 0x589   :  { %v443_v47 = vpack.c.bf16 %v4106_v46, %v4104_v43  ;;  %v3437_v48 = vpop.f32.mrb[7].mxu1  ;;  %v3442_v49 = vpop.f32.mrb[9].mxu0 }
 0x58a   :  { %v440_v50 = vpop.f32.mrb[10].mxu0 }
 0x58b   :  { %v3443_v51 = vpop.f32.mrb[11].mxu0 }
 0x58e   :  { %v489_v52 = vpop.f32.mrb[8].mxu1 }
 0x58f   :  { %v545_v53 = vmul.f32 0.35355338, %v489_v52  ;;  %v3448_v54 = vpop.f32.mrb[9].mxu1 }
 0x590   :  { %v492_v55 = vpop.f32.mrb[10].mxu1  ;;  %v539_v56 = vpop.f32.mrb[12].mxu0 }
 0x591   :  { %v546_v57 = vmul.f32 0.35355338, %v539_v56  ;;  %v3449_v59 = vpop.f32.mrb[11].mxu1  ;;  %v3454_v60 = vpop.f32.mrb[13].mxu0  ;;  %v547_v61 = vadd.f32 %v545_v53, %v4062_v58 }
 0x592   :  { %v542_v63 = vpop.f32.mrb[14].mxu0 }
 0x593   :  { %v3455_v0 = vpop.f32.mrb[15].mxu0  ;;  %v549_v1 = vsel %vm212_vm2, %v547_v61, -inf  ;;  %v548_v2 = vadd.f32 %v546_v57, %v4064_v62 }
 0x594   :  { %550 = vmax.xlane.f32.xlu0 %v549_v1 }
 0x595   :  { %v552_v3 = vsel %vm212_vm2, %v548_v2, -inf }
 0x596   :  { %553 = vmax.xlane.f32.xlu1 %v552_v3 }
 0x5a7   :  { %621 = vrot.lane.b32.xlu1 %v4041_v42, %s3884_s29 }
 0x5ab   :  { %768 = vrot.lane.b32.xlu1 %v4039_v39, %s3885_s30 }
 0x5af   :  { %818 = vrot.lane.b32.xlu1 %v4041_v42, %s3885_s30 }
 0x5b3   :  { %816 = vrot.lane.b32.xlu1 %v4041_v42, %s3886_s0 }
 0x621   :  { %v551_v4 = vpop.xlane.xlu0 %550 }
 0x622   :  { %v555_v5 = vsub.f32 %v547_v61, %v551_v4 }
 0x623   :  { %v554_v6 = vpop.xlane.xlu1 %553 }
 0x624   :  { %v557_v7 = vmul.f32 1.442695, %v555_v5  ;;  %v556_v8 = vsub.f32 %v548_v2, %v554_v6 }
 0x626   :  { %3771 = vpow2.f32 %v557_v7  ;;  %v559_v9 = vmul.f32 1.442695, %v556_v8 }
 0x627   :  { %v622_v10 = vpop.permute.xlu1 %621 }
 0x628   :  { %3773 = vpow2.f32 %v559_v9  ;;  %v627_v11 = vsel %vm351_vm3, %v622_v10, 0 }
 0x629   :  { %3463 = vmatpush3.bf16.msra.mxu0 %v627_v11 }
 0x62a   :  { %3474 = vmatprep.subr.bf16.mxu0 %v3877_v15 }
 0x62b   :  { %v769_v33 = vpop.permute.xlu1 %768 }
 0x62f   :  { %v819_v34 = vpop.permute.xlu1 %818 }
 0x630   :  { %v3772_v12 = vpop.eup %3771  ;;  %v824_v35 = vsel %vm212_vm2, %v819_v34, 0 }
 0x631   :  { %v561_v13 = vsel %vm212_vm2, %v3772_v12, 0.0 }
 0x632   :  { %v3774_v14 = vpop.eup %3773  ;;  %562 = vadd.xlane.f32.xlu0 %v561_v13 }
 0x633   :  { %v564_v16 = vsel %vm212_vm2, %v3774_v14, 0.0  ;;  %v817_v36 = vpop.permute.xlu1 %816 }
 0x636   :  { %565 = vadd.xlane.f32.xlu0 %v564_v16 }
 0x64c   :  { %573 = vrot.lane.b32.xlu0 %v4039_v39, %s3884_s29 }
 0x650   :  { %766 = vrot.lane.b32.xlu0 %v4039_v39, %s3886_s0 }
 0x6bf   :  { %v563_v17 = vpop.xlane.xlu0 %562 }
 0x6c0   :  { %3775 = vrcp.f32 %v563_v17 }
 0x6c3   :  { %v566_v18 = vpop.xlane.xlu0 %565 }
 0x6c4   :  { %3777 = vrcp.f32 %v566_v18 }
 0x6c7   :  { %v574_v19 = vpop.permute.xlu0 %573 }
 0x6c8   :  { %v579_v20 = vsel %vm351_vm3, %v574_v19, 0 }
 0x6c9   :  { %3457 = vmatpush3.bf16.msra.mxu1 %v579_v20 }
 0x6ca   :  { %v3776_v21 = vpop.eup %3775  ;;  %3468 = vmatprep.subr.bf16.mxu1 %v3877_v15 }
 0x6cb   :  { %v569_v23 = vmul.f32 %v3776_v21, %v3772_v12  ;;  %v767_v51 = vpop.permute.xlu0 %766 }
 0x6cd   :  { %v571_v24 = vpack.c.bf16 %v569_v23, %v569_v23 }
 0x6ce   :  { %v3778_v26 = vpop.eup %3777 }
 0x6cf   :  { %v570_v28 = vmul.f32 %v3778_v26, %v3774_v14  ;;  %3459 = vmatmul.mubr.msk.bf16.vlgmr.msra.gmra.mrb[12].mxu1 %vm212_vm2, %v571_v24 }
 0x6d0   :  { %3469 = vmatpush3.bf16.msra.mxu1 %v676_v25  ;;  %3470 = vmatprep.mubr.msk.bf16.mxu1 %vm3878_vm1, %v3877_v15 }
 0x6d1   :  { %v572_v29 = vpack.c.bf16 %v570_v28, %v570_v28  ;;  %3480 = vmatprep.subr.bf16.mxu1 %v3877_v15 }
 0x6d3   :  { %3465 = vmatmul.mubr.msk.bf16.vlgmr.msra.gmra.mrb[16].mxu0 %vm212_vm2, %v572_v29 }
 0x6d4   :  { %3475 = vmatpush3.bf16.msra.mxu0 %v723_v30  ;;  %3476 = vmatprep.mubr.msk.bf16.mxu0 %vm3878_vm1, %v3877_v15 }
 0x6d5   :  { %3486 = vmatprep.subr.bf16.mxu0 %v3877_v15 }
 0x6db   :  { %3477 = vmatmul.mubr.msk.bf16.vlgmr.msra.gmra.mrb[20].mxu0 %vm212_vm2, %v443_v47  ;;  %v774_v47 = vsel %vm212_vm2, %v769_v33, 0 }
 0x6dc   :  { %3488 = vmatprep.mubr.msk.bf16.mxu0 %vm3878_vm1, %v3877_v15 }
 0x6dd   :  { %3487 = vmatpush3.bf16.xpose.msra.mxu0 %v824_v35 }
 0x6de   :  { %3498 = vmatprep.subr.bf16.mxu0 %v3877_v15 }
 0x6e4   :  { %3489 = vmatmul.mubr.msk.bf16.vlgmr.msra.gmra.mrb[24].mxu0 %vm212_vm2, %v817_v36 }
 0x6e5   :  { %3500 = vmatprep.mubr.msk.bf16.mxu0 %vm3878_vm1, %v3877_v15 }
 0x7a2   :  { %v615_v37 = vpop.f32.mrb[12].mxu1 }
 0x7a3   :  { %v3460_v38 = vpop.f32.mrb[13].mxu1 }
 0x7a4   :  { %v618_v40 = vpop.f32.mrb[14].mxu1 }
 0x7a5   :  { %v3461_v41 = vpop.f32.mrb[15].mxu1 }
 0x7a6   :  { %v663_v43 = vpop.f32.mrb[16].mxu0 }
 0x7a7   :  { %v669_v44 = vpack.c.bf16 %v663_v43, %v615_v37  ;;  %v3466_v45 = vpop.f32.mrb[17].mxu0 }
 0x7a8   :  { %v666_v46 = vpop.f32.mrb[18].mxu0 }
 0x7a9   :  { %v3467_v48 = vpop.f32.mrb[19].mxu0  ;;  %3471 = vmatmul.mubr.msk.bf16.vlgmr.msra.gmra.mrb[16].mxu1 %vm212_vm2, %v669_v44  ;;  %v3206_v46 = vld [vmem:[%s4633_s6 + $0x8] sm:$0xf] }
 0x7aa   :  { %3481 = vmatpush3.bf16.xpose.msra.mxu1 %v774_v47  ;;  %3482 = vmatprep.mubr.msk.bf16.mxu1 %vm3878_vm1, %v3877_v15  ;;  %v997_v47 = vsel %vm351_vm3, %v3206_v46, 0 }
 0x7ab   :  { %3492 = vmatprep.subr.bf16.mxu1 %v3877_v15 }
 0x7ae   :  { %v759_v49 = vpop.f32.mrb[20].mxu0 }
 0x7af   :  { %v3478_v50 = vpop.f32.mrb[21].mxu0 }
 0x7b0   :  { %v762_v52 = vpop.f32.mrb[22].mxu0 }
 0x7b1   :  { %v3479_v53 = vpop.f32.mrb[23].mxu0  ;;  %3483 = vmatmul.mubr.msk.bf16.vlgmr.msra.gmra.mrb[20].mxu1 %vm212_vm2, %v767_v51 }
 0x7b2   :  { %3494 = vmatprep.mubr.msk.bf16.mxu1 %vm3878_vm1, %v3877_v15 }
 0x7b7   :  { %v860_v54 = vpop.f32.mrb[24].mxu0 }
 0x7b8   :  { %v867_v55 = vmul.f32 0.35355338, %v860_v54  ;;  %v3490_v56 = vpop.f32.mrb[25].mxu0 }
 0x7b9   :  { %v863_v57 = vpop.f32.mrb[26].mxu0 }
 0x7ba   :  { %v3491_v59 = vpop.f32.mrb[27].mxu0  ;;  %v869_v60 = vadd.f32 %v867_v55, %v4064_v62 }
 0x7bc   :  { %v873_v61 = vsel %vm212_vm2, %v869_v60, -inf }
 0x7bd   :  { %874 = vmax.xlane.f32.xlu1 %v873_v61 }
 0x7ce   :  { %942 = vrot.lane.b32.xlu1 %v4041_v42, %s4656_s2 }
 0x7d2   :  { %1044 = vrot.lane.b32.xlu1 %v4039_v39, %s4654_s25 }
 0x7d6   :  { %1094 = vrot.lane.b32.xlu1 %v4041_v42, %s4654_s25 }
 0x7da   :  { %1092 = vrot.lane.b32.xlu1 %v4041_v42, %s4652_s3 }
 0x84a   :  { %v875_v63 = vpop.xlane.xlu1 %874 }
 0x84b   :  { %v877_v2 = vsub.f32 %v869_v60, %v875_v63 }
 0x84d   :  { %v880_v3 = vmul.f32 1.442695, %v877_v2 }
 0x84e   :  { %v943_v0 = vpop.permute.xlu1 %942 }
 0x84f   :  { %v948_v1 = vsel %vm351_vm3, %v943_v0, 0  ;;  %3779 = vpow2.f32 %v880_v3 }
 0x850   :  { %3499 = vmatpush3.bf16.msra.mxu0 %v948_v1 }
 0x851   :  { %3510 = vmatprep.subr.bf16.mxu0 %v3877_v15 }
 0x852   :  { %v1045_v28 = vpop.permute.xlu1 %1044 }
 0x853   :  { %v1050_v30 = vsel %vm212_vm2, %v1045_v28, 0 }
 0x856   :  { %v1095_v55 = vpop.permute.xlu1 %1094 }
 0x857   :  { %v1100_v61 = vsel %vm212_vm2, %v1095_v55, 0 }
 0x859   :  { %v3780_v18 = vpop.eup %3779 }
 0x85a   :  { %v885_v19 = vsel %vm212_vm2, %v3780_v18, 0.0  ;;  %v1093_v0 = vpop.permute.xlu1 %1092 }
 0x87c   :  { %v712_v4 = vpop.f32.mrb[16].mxu1 }
 0x87d   :  { %v4179_v5 = vadd.f32 %v759_v49, %v712_v4  ;;  %v3472_v6 = vpop.f32.mrb[17].mxu1 }
 0x87e   :  { %v715_v7 = vpop.f32.mrb[18].mxu1 }
 0x87f   :  { %v4181_v8 = vadd.f32 %v762_v52, %v715_v7  ;;  %v3473_v9 = vpop.f32.mrb[19].mxu1 }
 0x884   :  { %v810_v10 = vpop.f32.mrb[20].mxu1 }
 0x885   :  { %v866_v11 = vmul.f32 0.35355338, %v810_v10  ;;  %v3484_v12 = vpop.f32.mrb[21].mxu1 }
 0x886   :  { %v813_v13 = vpop.f32.mrb[22].mxu1 }
 0x887   :  { %v3485_v14 = vpop.f32.mrb[23].mxu1  ;;  %v868_v16 = vadd.f32 %v866_v11, %v4062_v58 }
 0x889   :  { %v870_v17 = vsel %vm212_vm2, %v868_v16, -inf }
 0x88a   :  { %871 = vmax.xlane.f32.xlu0 %v870_v17 }
 0x88e   :  { %886 = vadd.xlane.f32.xlu0 %v885_v19 }
 0x917   :  { %v872_v20 = vpop.xlane.xlu0 %871 }
 0x918   :  { %v876_v21 = vsub.f32 %v868_v16, %v872_v20 }
 0x91a   :  { %v878_v22 = vmul.f32 1.442695, %v876_v21 }
 0x91b   :  { %v887_v23 = vpop.xlane.xlu0 %886 }
 0x91c   :  { %3781 = vpow2.f32 %v878_v22 }
 0x91d   :  { %3783 = vrcp.f32 %v887_v23 }
 0x926   :  { %v3782_v24 = vpop.eup %3781 }
 0x927   :  { %v3784_v25 = vpop.eup %3783  ;;  %v882_v26 = vsel %vm212_vm2, %v3782_v24, 0.0 }
 0x928   :  { %v891_v27 = vmul.f32 %v3784_v25, %v3780_v18  ;;  %883 = vadd.xlane.f32.xlu0 %v882_v26 }
 0x92a   :  { %v893_v29 = vpack.c.bf16 %v891_v27, %v891_v27 }
 0x92c   :  { %3501 = vmatmul.mubr.msk.bf16.vlgmr.msra.gmra.mrb[28].mxu0 %vm212_vm2, %v893_v29 }
 0x92d   :  { %3511 = vmatpush3.bf16.xpose.msra.mxu0 %v1050_v30  ;;  %3512 = vmatprep.mubr.msk.bf16.mxu0 %vm3878_vm1, %v3877_v15 }
 0x92e   :  { %3522 = vmatprep.subr.bf16.mxu0 %v3877_v15 }
 0x93e   :  { %894 = vrot.lane.b32.xlu0 %v4039_v39, %s4656_s2 }
 0x942   :  { %1042 = vrot.lane.b32.xlu0 %v4039_v39, %s4652_s3 }
 0x9b5   :  { %v884_v33 = vpop.xlane.xlu0 %883 }
 0x9b6   :  { %3785 = vrcp.f32 %v884_v33 }
 0x9b9   :  { %v895_v34 = vpop.permute.xlu0 %894 }
 0x9ba   :  { %v900_v35 = vsel %vm351_vm3, %v895_v34, 0 }
 0x9bb   :  { %3493 = vmatpush3.bf16.msra.mxu1 %v900_v35 }
 0x9bc   :  { %3504 = vmatprep.subr.bf16.mxu1 %v3877_v15 }
 0x9bd   :  { %v1043_v36 = vpop.permute.xlu0 %1042 }
 0x9be   :  { %3513 = vmatmul.mubr.msk.bf16.vlgmr.msra.gmra.mrb[32].mxu0 %vm212_vm2, %v1043_v36 }
 0x9bf   :  { %3524 = vmatprep.mubr.msk.bf16.mxu0 %vm3878_vm1, %v3877_v15 }
 0x9c0   :  { %v3786_v37 = vpop.eup %3785 }
 0x9c1   :  { %v890_v38 = vmul.f32 %v3786_v37, %v3782_v24  ;;  %v3212_v37 = vld [vmem:[%s4633_s6 + $0xc] sm:$0xf] }
 0x9c3   :  { %v892_v40 = vpack.c.bf16 %v890_v38, %v890_v38  ;;  %v1273_v38 = vsel %vm351_vm3, %v3212_v37, 0 }
 0x9c5   :  { %3495 = vmatmul.mubr.msk.bf16.vlgmr.msra.gmra.mrb[24].mxu1 %vm212_vm2, %v892_v40 }
 0x9c6   :  { %3506 = vmatprep.mubr.msk.bf16.mxu1 %vm3878_vm1, %v3877_v15  ;;  %3505 = vmatpush3.bf16.msra.mxu1 %v997_v47 }
 0x9c7   :  { %3516 = vmatprep.subr.bf16.mxu1 %v3877_v15 }
 0x9ff   :  { %v984_v41 = vpop.f32.mrb[28].mxu0 }
 0xa00   :  { %v3502_v43 = vpop.f32.mrb[29].mxu0 }
 0xa01   :  { %v987_v44 = vpop.f32.mrb[30].mxu0 }
 0xa02   :  { %v3503_v45 = vpop.f32.mrb[31].mxu0 }
 0xa91   :  { %v1086_v48 = vpop.f32.mrb[32].mxu0 }
 0xa92   :  { %v1142_v49 = vmul.f32 0.35355338, %v1086_v48  ;;  %v3514_v50 = vpop.f32.mrb[33].mxu0 }
 0xa93   :  { %v1089_v51 = vpop.f32.mrb[34].mxu0 }
 0xa94   :  { %v3515_v52 = vpop.f32.mrb[35].mxu0  ;;  %v1144_v53 = vadd.f32 %v1142_v49, %v4062_v58  ;;  %v3214_v51 = vld [vmem:[%s4634_s7] ss:$0 sm:$0xff] }
 0xa96   :  { %v1146_v54 = vsel %vm212_vm2, %v1144_v53, -inf }
 0xa97   :  { %1147 = vmax.xlane.f32.xlu0 %v1146_v54 }
 0xa98   :  { %v936_v56 = vpop.f32.mrb[24].mxu1 }
 0xa99   :  { %v990_v57 = vpack.c.bf16 %v984_v41, %v936_v56  ;;  %v3496_v59 = vpop.f32.mrb[25].mxu1 }
 0xa9a   :  { %v939_v60 = vpop.f32.mrb[26].mxu1 }
 0xa9b   :  { %v3497_v63 = vpop.f32.mrb[27].mxu1  ;;  %3507 = vmatmul.mubr.msk.bf16.vlgmr.msra.gmra.mrb[28].mxu1 %vm212_vm2, %v990_v57 }
 0xa9c   :  { %3517 = vmatpush3.bf16.xpose.msra.mxu1 %v1100_v61  ;;  %3518 = vmatprep.mubr.msk.bf16.mxu1 %vm3878_vm1, %v3877_v15 }
 0xa9d   :  { %3528 = vmatprep.subr.bf16.mxu1 %v3877_v15 }
 0xaa3   :  { %3519 = vmatmul.mubr.msk.bf16.vlgmr.msra.gmra.mrb[32].mxu1 %vm212_vm2, %v1093_v0 }
 0xaa4   :  { %3530 = vmatprep.mubr.msk.bf16.mxu1 %vm3878_vm1, %v3877_v15 }
 0xb24   :  { %v1148_v1 = vpop.xlane.xlu0 %1147 }
 0xb25   :  { %v1152_v2 = vsub.f32 %v1144_v53, %v1148_v1 }
 0xb27   :  { %v1154_v3 = vmul.f32 1.442695, %v1152_v2 }
 0xb29   :  { %3787 = vpow2.f32 %v1154_v3 }
 0xb33   :  { %v3788_v4 = vpop.eup %3787 }
 0xb34   :  { %v1158_v6 = vsel %vm212_vm2, %v3788_v4, 0.0 }
 0xb35   :  { %1159 = vadd.xlane.f32.xlu0 %v1158_v6 }
 0xb6e   :  { %v1033_v7 = vpop.f32.mrb[28].mxu1 }
 0xb6f   :  { %v1040_v9 = vadd.f32 %v1033_v7, %v4179_v5  ;;  %v3508_v10 = vpop.f32.mrb[29].mxu1 }
 0xb70   :  { %v1036_v11 = vpop.f32.mrb[30].mxu1 }
 0xb71   :  { %v4222_v12 = vadd.f32 %v1036_v11, %v4181_v8  ;;  %v3509_v13 = vpop.f32.mrb[31].mxu1 }
 0xb76   :  { %v1136_v14 = vpop.f32.mrb[32].mxu1 }
 0xb77   :  { %v1143_v16 = vmul.f32 0.35355338, %v1136_v14  ;;  %v3520_v17 = vpop.f32.mrb[33].mxu1 }
 0xb78   :  { %v1139_v18 = vpop.f32.mrb[34].mxu1 }
 0xb79   :  { %v3521_v19 = vpop.f32.mrb[35].mxu1  ;;  %v1145_v20 = vadd.f32 %v1143_v16, %v4064_v62 }
 0xb7b   :  { %v1149_v21 = vsel %vm212_vm2, %v1145_v20, -inf }
 0xb7c   :  { %1150 = vmax.xlane.f32.xlu1 %v1149_v21  ;;  %v3215_v21 = vld [vmem:[%s4635_s8] ss:$0 sm:$0xff] }
 0xb8d   :  { %1218 = vrot.lane.b32.xlu1 %v4041_v42, %s4650_s22 }
 0xbc2   :  { %v1160_v27 = vpop.xlane.xlu0 %1159 }
 0xc09   :  { %v1151_v5 = vpop.xlane.xlu1 %1150 }
 0xc0a   :  { %v1153_v22 = vsub.f32 %v1145_v20, %v1151_v5 }
 0xc0c   :  { %v1156_v23 = vmul.f32 1.442695, %v1153_v22 }
 0xc0d   :  { %v1219_v8 = vpop.permute.xlu1 %1218 }
 0xc0e   :  { %3789 = vpow2.f32 %v1156_v23  ;;  %v1224_v24 = vsel %vm351_vm3, %v1219_v8, 0 }
 0xc0f   :  { %3529 = vmatpush3.bf16.msra.mxu1 %v1224_v24  ;;  %3791 = vrcp.f32 %v1160_v27  ;;  %v3216_v24 = vld [vmem:[%s4636_s9] ss:$0 sm:$0xff] }
 0xc10   :  { %3540 = vmatprep.subr.bf16.mxu1 %v3877_v15 }
 0xc18   :  { %v3790_v25 = vpop.eup %3789 }
 0xc19   :  { %v1161_v26 = vsel %vm212_vm2, %v3790_v25, 0.0  ;;  %v3792_v42 = vpop.eup %3791 }
 0xc1a   :  { %1162 = vadd.xlane.f32.xlu0 %v1161_v26  ;;  %v1166_v29 = vmul.f32 %v3792_v42, %v3788_v4 }
 0xc1c   :  { %v1168_v34 = vpack.c.bf16 %v1166_v29, %v1166_v29  ;;  %v3744_v29 = vld [vmem:[%s4639_s12 + $0x8] sm:$0xff]  }
 0xc30   :  { %1170 = vrot.lane.b32.xlu0 %v4039_v39, %s4650_s22 }
 0xca7   :  { %v1163_v28 = vpop.xlane.xlu0 %1162 }
 0xca8   :  { %3793 = vrcp.f32 %v1163_v28  ;;  %v3743_v28 = vld [vmem:[%s4639_s12] sm:$0xff]  }
 0xcab   :  { %v1171_v30 = vpop.permute.xlu0 %1170 }
 0xcac   :  { %v1176_v33 = vsel %vm351_vm3, %v1171_v30, 0  ;;  %v3745_v30 = vld [vmem:[%s4639_s12 + $0x10] sm:$0xff]  }
 0xcad   :  { %3523 = vmatpush3.bf16.msra.mxu0 %v1176_v33  ;;  %v3746_v33 = vld [vmem:[%s4639_s12 + $0x18] sm:$0xff]  }
 0xcae   :  { %3534 = vmatprep.subr.bf16.mxu0 %v3877_v15 }
 0xcb0   :  { %3525 = vmatmul.mubr.msk.bf16.vlgmr.msra.gmra.mrb[36].mxu0 %vm212_vm2, %v1168_v34  ;;  %v3217_v34 = vld [vmem:[%s4638_s11] ss:$0 sm:$0xff] }
 0xcb1   :  { %3536 = vmatprep.mubr.msk.bf16.mxu0 %vm3878_vm1, %v3877_v15  ;;  %3535 = vmatpush3.bf16.msra.mxu0 %v1273_v38 }
 0xcb2   :  { %v3794_v35 = vpop.eup %3793  ;;  %3548 = vmatprep.subr.bf16.mxu0 %v3877_v15 }
 0xcb3   :  { %v1167_v39 = vmul.f32 %v3794_v35, %v3790_v25 }
 0xcb5   :  { %v1169_v36 = vpack.c.bf16 %v1167_v39, %v1167_v39 }
 0xcb7   :  { %3531 = vmatmul.mubr.msk.bf16.vlgmr.msra.gmra.mrb[36].mxu1 %vm212_vm2, %v1169_v36 }
 0xcb8   :  { %3544 = vmatprep.mubr.msk.bf16.mxu1 %vm3878_vm1, %v3877_v15 }
 0xd83   :  { %v1212_v40 = vpop.f32.mrb[36].mxu0 }
 0xd84   :  { %v3526_v41 = vpop.f32.mrb[37].mxu0 }
 0xd85   :  { %v1215_v43 = vpop.f32.mrb[38].mxu0 }
 0xd86   :  { %v3527_v44 = vpop.f32.mrb[39].mxu0 }
 0xd8a   :  { %v1260_v45 = vpop.f32.mrb[36].mxu1 }
 0xd8b   :  { %v1266_v46 = vpack.c.bf16 %v1260_v45, %v1212_v40  ;;  %v3532_v47 = vpop.f32.mrb[37].mxu1 }
 0xd8c   :  { %v1263_v48 = vpop.f32.mrb[38].mxu1 }
 0xd8d   :  { %v3533_v49 = vpop.f32.mrb[39].mxu1  ;;  %3537 = vmatmul.mubr.msk.bf16.vlgmr.msra.gmra.mrb[40].mxu0 %vm212_vm2, %v1266_v46 }
 0xd8e   :  { %3556 = vmatprep.mubr.msk.bf16.mxu0 %vm3878_vm1, %v3877_v15  ;;  %3549 = vmatpush3.bf16.msra.mxu0 %v3743_v28 }
 0xd8f   :  { %3550 = vmatprep.subr.bf16.mxu0 %v3877_v15 }
 0xd92   :  { %3551 = vmatpush3.bf16.msra.mxu0 %v3744_v29  ;;  %v3234_v29 = vld [vmem:[%s4632_s5 + $0x1] ss:$0 sm:$0xff] }
 0xd93   :  { %3552 = vmatprep.subr.bf16.mxu0 %v3877_v15 }
 0xd96   :  { %3553 = vmatpush3.bf16.msra.mxu0 %v3745_v30 }
 0xd97   :  { %3554 = vmatprep.subr.bf16.mxu0 %v3877_v15 }
 0xd9a   :  { %3555 = vmatpush3.bf16.msra.mxu0 %v3746_v33 }
 0xd9b   :  { %3574 = vmatprep.subr.bf16.mxu0 %v3877_v15 }
 0xe60   :  { %v1309_v50 = vpop.f32.mrb[40].mxu0 }
 0xe61   :  { %v1316_v52 = vadd.f32 %v1309_v50, %v1040_v9  ;;  %v3538_v53 = vpop.f32.mrb[41].mxu0 }
 0xe62   :  { %v1312_v54 = vpop.f32.mrb[42].mxu0  ;;  %v3221_v53 = vld [vmem:[%s4640_s13] ss:$0 sm:$0xff] }
 0xe63   :  { %v1325_v55 = vadd.f32 %v3214_v51, %v1316_v52  ;;  %v1317_v56 = vadd.f32 %v1312_v54, %v4222_v12  ;;  %v3539_v57 = vpop.f32.mrb[43].mxu0  ;;  %v3742_v12 = vld [vmem:[%s4637_s10 + $0x8] sm:$0xff]  }
 0xe65   :  { %v1326_v59 = vadd.f32 %v3214_v51, %v1317_v56  ;;  %v1327_v60 = vadd.f32 %v1325_v55, %v4027_v31 }
 0xe67   :  { %v1331_v61 = vsel %vm71_vm0, %v1327_v60, 0.0  ;;  %v1328_v63 = vadd.f32 %v1326_v59, %v4029_v32  ;;  %v3741_v32 = vld [vmem:[%s4637_s10] sm:$0xff]  }
 0xe68   :  { %1332 = vadd.xlane.f32.xlu1 %v1331_v61  ;;  %3541 = vmatpush3.bf16.msra.mxu1 %v3741_v32 }
 0xe69   :  { %v1334_v0 = vsel %vm71_vm0, %v1328_v63, 0.0  ;;  %3542 = vmatprep.subr.bf16.mxu1 %v3877_v15 }
 0xe6a   :  { %1335 = vadd.xlane.f32.xlu0 %v1334_v0 }
 0xe6c   :  { %3543 = vmatpush3.bf16.msra.mxu1 %v3742_v12  ;;  %v3747_v12 = vld [vmem:[%s4664_s26 + $0x10] sm:$0xff]  }
 0xe6d   :  { %3560 = vmatprep.subr.bf16.mxu1 %v3877_v15 }
 0xef5   :  { %v1333_v1 = vpop.xlane.xlu1 %1332 }
 0xef6   :  { %v1337_v2 = vmul.f32 0.03125, %v1333_v1 }
 0xef7   :  { %v1336_v3 = vpop.xlane.xlu0 %1335 }
 0xef8   :  { %v1339_v4 = vsub.f32 %v1327_v60, %v1337_v2  ;;  %v1338_v6 = vmul.f32 0.03125, %v1336_v3 }
 0xefa   :  { %v1340_v7 = vsub.f32 %v1328_v63, %v1338_v6  ;;  %v1341_v9 = vmul.f32 %v1339_v4, %v1339_v4 }
 0xefc   :  { %v1343_v10 = vsel %vm71_vm0, %v1341_v9, 0.0  ;;  %v1342_v11 = vmul.f32 %v1340_v7, %v1340_v7 }
 0xefd   :  { %1344 = vadd.xlane.f32.xlu0 %v1343_v10 }
 0xefe   :  { %v1346_v31 = vsel %vm71_vm0, %v1342_v11, 0.0 }
 0xeff   :  { %1347 = vadd.xlane.f32.xlu1 %v1346_v31 }
 0xf8a   :  { %v1345_v13 = vpop.xlane.xlu0 %1344 }
 0xf8b   :  { %v1349_v14 = vmul.f32 0.03125, %v1345_v13  ;;  %v3748_v13 = vld [vmem:[%s4664_s26 + $0x18] sm:$0xff]  }
 0xf8c   :  { %v1348_v16 = vpop.xlane.xlu1 %1347 }
 0xf8d   :  { %v1351_v17 = vadd.f32 1e-12, %v1349_v14  ;;  %v1350_v18 = vmul.f32 0.03125, %v1348_v16 }
 0xf8f   :  { %3795 = vrsqrt.f32 %v1351_v17  ;;  %v1352_v19 = vadd.f32 1e-12, %v1350_v18 }
 0xf91   :  { %3797 = vrsqrt.f32 %v1352_v19 }
 0xf99   :  { %v3796_v20 = vpop.eup %3795 }
 0xf9a   :  { %v1355_v5 = vmul.f32 %v3796_v20, %v1339_v4 }
 0xf9b   :  { %v3798_v22 = vpop.eup %3797 }
 0xf9c   :  { %v1363_v23 = vmul.f32 %v3215_v21, %v1355_v5  ;;  %v1356_v8 = vmul.f32 %v3798_v22, %v1340_v7  ;;  %v3227_v5 = vld [vmem:[%s4641_s14] ss:$0 sm:$0xff] }
 0xf9e   :  { %v1364_v25 = vmul.f32 %v3215_v21, %v1356_v8  ;;  %v1371_v26 = vadd.f32 %v3216_v24, %v1363_v23 }
 0xfa0   :  { %v1372_v27 = vadd.f32 %v3216_v24, %v1364_v25  ;;  %v3228_v25 = vld [vmem:[%s4642_s15] ss:$0 sm:$0xff] }
 0xfa2   :  { %v1373_v42 = vpack.c.bf16 %v1372_v27, %v1371_v26 }
 0xfa4   :  { %3545 = vmatmul.mubr.msk.bf16.vlgmr.msra.gmra.mrb[40].mxu1 %vm71_vm0, %v1373_v42 }
 0xfa5   :  { %3564 = vmatprep.mubr.msk.bf16.mxu1 %vm3878_vm1, %v3877_v15  ;;  %3561 = vmatpush3.bf16.msra.mxu1 %v3747_v12 }
 0xfa6   :  { %3562 = vmatprep.subr.bf16.mxu1 %v3877_v15 }
 0xfa9   :  { %3563 = vmatpush3.bf16.msra.mxu1 %v3748_v13 }
 0xfaa   :  { %3568 = vmatprep.subr.bf16.mxu1 %v3877_v15 }
0x1077   :  { %v1434_v35 = vpop.f32.mrb[40].mxu1 }
0x1078   :  { %v1435_v39 = vadd.f32 %v3217_v34, %v1434_v35  ;;  %v3546_v36 = vpop.f32.mrb[41].mxu1 }
0x1079   :  { %v1437_v37 = vpop.f32.mrb[42].mxu1 }
0x107a   :  { %v1443_v38 = vmul.f32 0.70710677, %v1435_v39  ;;  %v1438_v40 = vadd.f32 %v3217_v34, %v1437_v37  ;;  %v3547_v41 = vpop.f32.mrb[43].mxu1  ;;  %v1441_v47 = vmul.f32 0.5, %v1435_v39 }
0x107c   :  { %3799 = verf.f32 %v1443_v38  ;;  %v1444_v43 = vmul.f32 0.70710677, %v1438_v40  ;;  %v1442_v48 = vmul.f32 0.5, %v1438_v40 }
0x107e   :  { %3801 = verf.f32 %v1444_v43 }
0x1086   :  { %v3800_v44 = vpop.eup %3799 }
0x1087   :  { %v1447_v45 = vadd.f32 1.0, %v3800_v44 }
0x1088   :  { %v3802_v46 = vpop.eup %3801 }
0x1089   :  { %v1448_v49 = vadd.f32 1.0, %v3802_v46  ;;  %v1449_v50 = vmul.f32 %v1447_v45, %v1441_v47 }
0x108b   :  { %v1450_v51 = vmul.f32 %v1448_v49, %v1442_v48 }
0x108d   :  { %v1451_v52 = vpack.c.bf16 %v1450_v51, %v1449_v50 }
0x108f   :  { %3557 = vmatmul.mubr.msk.bf16.vlgmr.msra.gmra.mrb[44].mxu0 %vm1491_vm4, %v1451_v52 }
0x1090   :  { %3576 = vmatprep.mubr.msk.bf16.mxu0 %vm3878_vm1, %v3877_v15 }
0x1162   :  { %v1529_v54 = vpop.f32.mrb[44].mxu0 }
0x1163   :  { %v1530_v55 = vadd.f32 %v3221_v53, %v1529_v54  ;;  %v3558_v56 = vpop.f32.mrb[45].mxu0 }
0x1164   :  { %v1532_v57 = vpop.f32.mrb[46].mxu0 }
0x1165   :  { %v1533_v59 = vadd.f32 %v3221_v53, %v1532_v57  ;;  %v3559_v60 = vpop.f32.mrb[47].mxu0  ;;  %v1536_v61 = vadd.f32 %v1530_v55, %v1371_v26 }
0x1167   :  { %v1540_v63 = vsel %vm71_vm0, %v1536_v61, 0.0  ;;  %v1537_v0 = vadd.f32 %v1533_v59, %v1372_v27 }
0x1168   :  { %1541 = vadd.xlane.f32.xlu0 %v1540_v63 }
0x1169   :  { %v1543_v1 = vsel %vm71_vm0, %v1537_v0, 0.0 }
0x116a   :  { %1544 = vadd.xlane.f32.xlu1 %v1543_v1 }
0x11f5   :  { %v1542_v2 = vpop.xlane.xlu0 %1541 }
0x11f6   :  { %v1546_v3 = vmul.f32 0.03125, %v1542_v2 }
0x11f7   :  { %v1545_v4 = vpop.xlane.xlu1 %1544 }
0x11f8   :  { %v1548_v6 = vsub.f32 %v1536_v61, %v1546_v3  ;;  %v1547_v7 = vmul.f32 0.03125, %v1545_v4 }
0x11fa   :  { %v1549_v9 = vsub.f32 %v1537_v0, %v1547_v7  ;;  %v1550_v10 = vmul.f32 %v1548_v6, %v1548_v6 }
0x11fc   :  { %v1552_v11 = vsel %vm71_vm0, %v1550_v10, 0.0  ;;  %v1551_v31 = vmul.f32 %v1549_v9, %v1549_v9 }
0x11fd   :  { %1553 = vadd.xlane.f32.xlu0 %v1552_v11 }
0x11fe   :  { %v1555_v32 = vsel %vm71_vm0, %v1551_v31, 0.0 }
0x11ff   :  { %1556 = vadd.xlane.f32.xlu1 %v1555_v32 }
0x128a   :  { %v1554_v14 = vpop.xlane.xlu0 %1553 }
0x128b   :  { %v1558_v16 = vmul.f32 0.03125, %v1554_v14 }
0x128c   :  { %v1557_v17 = vpop.xlane.xlu1 %1556 }
0x128d   :  { %v1560_v18 = vadd.f32 1e-12, %v1558_v16  ;;  %v1559_v19 = vmul.f32 0.03125, %v1557_v17 }
0x128f   :  { %3803 = vrsqrt.f32 %v1560_v18  ;;  %v1561_v20 = vadd.f32 1e-12, %v1559_v19 }
0x1291   :  { %3805 = vrsqrt.f32 %v1561_v20 }
0x1299   :  { %v3804_v21 = vpop.eup %3803 }
0x129a   :  { %v1564_v22 = vmul.f32 %v3804_v21, %v1548_v6 }
0x129b   :  { %v3806_v23 = vpop.eup %3805 }
0x129c   :  { %v1572_v8 = vmul.f32 %v3227_v5, %v1564_v22  ;;  %v1565_v24 = vmul.f32 %v3806_v23, %v1549_v9 }
0x129e   :  { %v1573_v26 = vmul.f32 %v3227_v5, %v1565_v24  ;;  %v4319_v27 = vadd.f32 %v3228_v25, %v1572_v8 }
0x12a0   :  { %v4321_v42 = vadd.f32 %v3228_v25, %v1573_v26 }
0x12a2   :  { %v1582_v28 = vpack.c.bf16 %v4321_v42, %v4319_v27 }
0x12a4   :  { %3565 = vmatmul.mubr.msk.bf16.vlgmr.msra.gmra.mrb[44].mxu1 %vm71_vm0, %v1582_v28 }
0x12a5   :  { %3570 = vmatprep.mubr.msk.bf16.mxu1 %vm3878_vm1, %v3877_v15 }
0x1377   :  { %v1645_v30 = vpop.f32.mrb[44].mxu1 }
0x1378   :  { %v1646_v33 = vadd.f32 %v3234_v29, %v1645_v30  ;;  %v3566_v34 = vpop.f32.mrb[45].mxu1 }
0x1379   :  { %v1648_v35 = vpop.f32.mrb[46].mxu1 }
0x137a   :  { %v4331_v39 = vpack.c.bf16 %v1646_v33, %v1646_v33  ;;  %v1649_v36 = vadd.f32 %v3234_v29, %v1648_v35  ;;  %v3567_v37 = vpop.f32.mrb[47].mxu1 }
0x137c   :  { %v4333_v38 = vpack.c.bf16 %v1649_v36, %v1649_v36  ;;  %1655 = vrot.lane.b32.xlu0 %v4331_v39, %s3879_s24 }
0x137e   :  { %1704 = vrot.lane.b32.xlu1 %v4333_v38, %s3879_s24 }
0x13ee   :  { %v1656_v40 = vpop.permute.xlu0 %1655 }
0x13ef   :  { %v1661_v41 = vsel %vm212_vm2, %v1656_v40, 0 }
0x13f0   :  { %3569 = vmatpush3.bf16.xpose.msra.mxu1 %v1661_v41  ;;  %v1705_v43 = vpop.permute.xlu1 %1704 }
0x13f1   :  { %v1710_v44 = vsel %vm212_vm2, %v1705_v43, 0  ;;  %3580 = vmatprep.subr.bf16.mxu1 %v3877_v15 }
0x13f2   :  { %3575 = vmatpush3.bf16.xpose.msra.mxu0 %v1710_v44 }
0x13f3   :  { %3586 = vmatprep.subr.bf16.mxu0 %v3877_v15 }
0x13f7   :  { %3571 = vmatmul.mubr.msk.bf16.vlgmr.msra.gmra.mrb[48].mxu1 %vm212_vm2, %v4331_v39 }
0x13f8   :  { %3582 = vmatprep.mubr.msk.bf16.mxu1 %vm3878_vm1, %v3877_v15 }
0x13f9   :  { %3577 = vmatmul.mubr.msk.bf16.vlgmr.msra.gmra.mrb[48].mxu0 %vm212_vm2, %v4333_v38 }
0x13fa   :  { %3588 = vmatprep.mubr.msk.bf16.mxu0 %vm3878_vm1, %v3877_v15 }
0x14ca   :  { %v1697_v45 = vpop.f32.mrb[48].mxu1 }
0x14cb   :  { %v1752_v46 = vmul.f32 0.35355338, %v1697_v45  ;;  %v3572_v47 = vpop.f32.mrb[49].mxu1 }
0x14cc   :  { %v1700_v48 = vpop.f32.mrb[50].mxu1  ;;  %v1746_v49 = vpop.f32.mrb[48].mxu0 }
0x14cd   :  { %v1753_v50 = vmul.f32 0.35355338, %v1746_v49  ;;  %v3573_v51 = vpop.f32.mrb[51].mxu1  ;;  %v3578_v52 = vpop.f32.mrb[49].mxu0  ;;  %v1754_v53 = vadd.f32 %v1752_v46, %v4062_v58 }
0x14ce   :  { %v1749_v54 = vpop.f32.mrb[50].mxu0 }
0x14cf   :  { %v3579_v55 = vpop.f32.mrb[51].mxu0  ;;  %v1756_v56 = vsel %vm212_vm2, %v1754_v53, -inf  ;;  %v1755_v57 = vadd.f32 %v1753_v50, %v4064_v62 }
0x14d0   :  { %1757 = vmax.xlane.f32.xlu1 %v1756_v56 }
0x14d1   :  { %v1759_v59 = vsel %vm212_vm2, %v1755_v57, -inf }
0x14d2   :  { %1760 = vmax.xlane.f32.xlu0 %v1759_v59 }
0x14e1   :  { %1828 = vrot.lane.b32.xlu1 %v4333_v38, %s3881_s27 }
0x14e5   :  { %1881 = vrot.lane.b32.xlu1 %v4331_v39, %s3882_s28 }
0x155d   :  { %v1758_v60 = vpop.xlane.xlu1 %1757 }
0x155e   :  { %v1762_v61 = vsub.f32 %v1754_v53, %v1758_v60 }
0x155f   :  { %v1761_v63 = vpop.xlane.xlu0 %1760 }
0x1560   :  { %v1764_v0 = vmul.f32 1.442695, %v1762_v61  ;;  %v1763_v1 = vsub.f32 %v1755_v57, %v1761_v63 }
0x1561   :  { %v1829_v2 = vpop.permute.xlu1 %1828 }
0x1562   :  { %3807 = vpow2.f32 %v1764_v0  ;;  %v1766_v3 = vmul.f32 1.442695, %v1763_v1  ;;  %v1834_v4 = vsel %vm351_vm3, %v1829_v2, 0 }
0x1563   :  { %3587 = vmatpush3.bf16.msra.mxu0 %v1834_v4 }
0x1564   :  { %3809 = vpow2.f32 %v1766_v3  ;;  %3598 = vmatprep.subr.bf16.mxu0 %v3877_v15 }
0x1565   :  { %v1882_v11 = vpop.permute.xlu1 %1881 }
0x1566   :  { %v1887_v21 = vsel %vm212_vm2, %v1882_v11, 0 }
0x156c   :  { %v3808_v6 = vpop.eup %3807 }
0x156d   :  { %v1768_v7 = vsel %vm212_vm2, %v3808_v6, 0.0 }
0x156e   :  { %v3810_v9 = vpop.eup %3809  ;;  %1769 = vadd.xlane.f32.xlu0 %v1768_v7 }
0x156f   :  { %v1771_v10 = vsel %vm212_vm2, %v3810_v9, 0.0 }
0x1570   :  { %1772 = vadd.xlane.f32.xlu1 %v1771_v10  ;;  %v3247_v10 = vld [vmem:[%s4633_s6 + $0x14] sm:$0xf] }
0x1581   :  { %1931 = vrot.lane.b32.xlu1 %v4333_v38, %s3882_s28 }
0x1584   :  { %1780 = vrot.lane.b32.xlu0 %v4331_v39, %s3881_s27 }
0x1585   :  { %1929 = vrot.lane.b32.xlu1 %v4333_v38, %s3883_s4 }
0x1588   :  { %1879 = vrot.lane.b32.xlu0 %v4331_v39, %s3883_s4  ;;  %s4668_s4 = smov 48  }
0x15fb   :  { %v1770_v31 = vpop.xlane.xlu0 %1769 }
0x15fc   :  { %3811 = vrcp.f32 %v1770_v31 }
0x15fd   :  { %v1773_v32 = vpop.xlane.xlu1 %1772 }
0x15fe   :  { %3813 = vrcp.f32 %v1773_v32  ;;  %v2110_v32 = vsel %vm351_vm3, %v3247_v10, 0 }
0x15ff   :  { %v1781_v12 = vpop.permute.xlu0 %1780 }
0x1600   :  { %v1786_v13 = vsel %vm351_vm3, %v1781_v12, 0 }
0x1601   :  { %3581 = vmatpush3.bf16.msra.mxu1 %v1786_v13  ;;  %v1932_v20 = vpop.permute.xlu1 %1931  ;;  %v3242_v13 = vld [vmem:[%s4633_s6 + $0x10] sm:$0xf] }
0x1602   :  { %3592 = vmatprep.subr.bf16.mxu1 %v3877_v15  ;;  %v1937_v22 = vsel %vm212_vm2, %v1932_v20, 0 }
0x1603   :  { %v1880_v23 = vpop.permute.xlu0 %1879 }
0x1605   :  { %v1930_v8 = vpop.permute.xlu1 %1929 }
0x1606   :  { %v3812_v14 = vpop.eup %3811 }
0x1607   :  { %v1776_v16 = vmul.f32 %v3812_v14, %v3808_v6 }
0x1608   :  { %v3814_v17 = vpop.eup %3813 }
0x1609   :  { %v1777_v18 = vmul.f32 %v3814_v17, %v3810_v9  ;;  %v1778_v19 = vpack.c.bf16 %v1776_v16, %v1776_v16  ;;  %v2157_v17 = vsel %vm351_vm3, %v3242_v13, 0 }
0x160b   :  { %3583 = vmatmul.mubr.msk.bf16.vlgmr.msra.gmra.mrb[52].mxu1 %vm212_vm2, %v1778_v19  ;;  %v1779_v5 = vpack.c.bf16 %v1777_v18, %v1777_v18 }
0x160c   :  { %3593 = vmatpush3.bf16.xpose.msra.mxu1 %v1887_v21  ;;  %3594 = vmatprep.mubr.msk.bf16.mxu1 %vm3878_vm1, %v3877_v15 }
0x160d   :  { %3589 = vmatmul.mubr.msk.bf16.vlgmr.msra.gmra.mrb[52].mxu0 %vm212_vm2, %v1779_v5  ;;  %3604 = vmatprep.subr.bf16.mxu1 %v3877_v15 }
0x160e   :  { %3599 = vmatpush3.bf16.xpose.msra.mxu0 %v1937_v22  ;;  %3600 = vmatprep.mubr.msk.bf16.mxu0 %vm3878_vm1, %v3877_v15 }
0x160f   :  { %3610 = vmatprep.subr.bf16.mxu0 %v3877_v15 }
0x1613   :  { %3595 = vmatmul.mubr.msk.bf16.vlgmr.msra.gmra.mrb[56].mxu1 %vm212_vm2, %v1880_v23 }
0x1614   :  { %3606 = vmatprep.mubr.msk.bf16.mxu1 %vm3878_vm1, %v3877_v15 }
0x1615   :  { %3601 = vmatmul.mubr.msk.bf16.vlgmr.msra.gmra.mrb[56].mxu0 %vm212_vm2, %v1930_v8 }
0x1616   :  { %3612 = vmatprep.mubr.msk.bf16.mxu0 %vm3878_vm1, %v3877_v15 }
0x16de   :  { %v4389_v24 = vpop.f32.mrb[52].mxu1 }
0x16df   :  { %v3584_v25 = vpop.f32.mrb[53].mxu1 }
0x16e0   :  { %v1825_v26 = vpop.f32.mrb[54].mxu1  ;;  %v4391_v28 = vpop.f32.mrb[52].mxu0 }
0x16e1   :  { %v1876_v29 = vpack.c.bf16 %v4391_v28, %v4389_v24  ;;  %v3585_v30 = vpop.f32.mrb[55].mxu1  ;;  %v3590_v33 = vpop.f32.mrb[53].mxu0 }
0x16e2   :  { %v1873_v34 = vpop.f32.mrb[54].mxu0 }
0x16e3   :  { %v3591_v35 = vpop.f32.mrb[55].mxu0 }
0x16e6   :  { %v1923_v36 = vpop.f32.mrb[56].mxu1 }
0x16e7   :  { %v1979_v37 = vmul.f32 0.35355338, %v1923_v36  ;;  %v3596_v40 = vpop.f32.mrb[57].mxu1 }
0x16e8   :  { %v1926_v41 = vpop.f32.mrb[58].mxu1  ;;  %v1973_v43 = vpop.f32.mrb[56].mxu0 }
0x16e9   :  { %v1980_v44 = vmul.f32 0.35355338, %v1973_v43  ;;  %v3597_v45 = vpop.f32.mrb[59].mxu1  ;;  %v3602_v46 = vpop.f32.mrb[57].mxu0  ;;  %v1981_v47 = vadd.f32 %v1979_v37, %v4062_v58 }
0x16ea   :  { %v1976_v48 = vpop.f32.mrb[58].mxu0 }
0x16eb   :  { %v3603_v49 = vpop.f32.mrb[59].mxu0  ;;  %v1983_v50 = vsel %vm212_vm2, %v1981_v47, -inf  ;;  %v1982_v51 = vadd.f32 %v1980_v44, %v4064_v62 }
0x16ec   :  { %1984 = vmax.xlane.f32.xlu0 %v1983_v50 }
0x16ed   :  { %v1986_v52 = vsel %vm212_vm2, %v1982_v51, -inf }
0x16ee   :  { %1987 = vmax.xlane.f32.xlu1 %v1986_v52 }
0x16ff   :  { %2055 = vrot.lane.b32.xlu1 %v4333_v38, %s3884_s29 }
0x1703   :  { %2202 = vrot.lane.b32.xlu1 %v4331_v39, %s3885_s30 }
0x1707   :  { %2252 = vrot.lane.b32.xlu1 %v4333_v38, %s3885_s30  ;;  %s4670_s30 = smov 104  }
0x170b   :  { %2250 = vrot.lane.b32.xlu1 %v4333_v38, %s3886_s0 }
0x1779   :  { %v1985_v53 = vpop.xlane.xlu0 %1984 }
0x177a   :  { %v1989_v54 = vsub.f32 %v1981_v47, %v1985_v53 }
0x177b   :  { %v1988_v55 = vpop.xlane.xlu1 %1987 }
0x177c   :  { %v1991_v56 = vmul.f32 1.442695, %v1989_v54  ;;  %v1990_v57 = vsub.f32 %v1982_v51, %v1988_v55 }
0x177e   :  { %3815 = vpow2.f32 %v1991_v56  ;;  %v1993_v59 = vmul.f32 1.442695, %v1990_v57 }
0x177f   :  { %v2056_v60 = vpop.permute.xlu1 %2055 }
0x1780   :  { %3817 = vpow2.f32 %v1993_v59  ;;  %v2061_v61 = vsel %vm351_vm3, %v2056_v60, 0 }
0x1781   :  { %3611 = vmatpush3.bf16.msra.mxu0 %v2061_v61 }
0x1782   :  { %3622 = vmatprep.subr.bf16.mxu0 %v3877_v15 }
0x1783   :  { %v2203_v18 = vpop.permute.xlu1 %2202 }
0x1787   :  { %v2253_v19 = vpop.permute.xlu1 %2252 }
0x1788   :  { %v3816_v63 = vpop.eup %3815  ;;  %v2258_v20 = vsel %vm212_vm2, %v2253_v19, 0 }
0x1789   :  { %v1995_v0 = vsel %vm212_vm2, %v3816_v63, 0.0 }
0x178a   :  { %v3818_v1 = vpop.eup %3817  ;;  %1996 = vadd.xlane.f32.xlu0 %v1995_v0 }
0x178b   :  { %v1998_v2 = vsel %vm212_vm2, %v3818_v1, 0.0  ;;  %v2251_v21 = vpop.permute.xlu1 %2250 }
0x178e   :  { %1999 = vadd.xlane.f32.xlu0 %v1998_v2 }
0x17a4   :  { %2007 = vrot.lane.b32.xlu0 %v4331_v39, %s3884_s29  ;;  %s4669_s29 = smov 72  }
0x17a8   :  { %2200 = vrot.lane.b32.xlu0 %v4331_v39, %s3886_s0 }
0x1817   :  { %v1997_v3 = vpop.xlane.xlu0 %1996 }
0x1818   :  { %3819 = vrcp.f32 %v1997_v3 }
0x181b   :  { %v2000_v4 = vpop.xlane.xlu0 %1999 }
0x181c   :  { %3821 = vrcp.f32 %v2000_v4 }
0x181f   :  { %v2008_v6 = vpop.permute.xlu0 %2007 }
0x1820   :  { %v2013_v7 = vsel %vm351_vm3, %v2008_v6, 0 }
0x1821   :  { %3605 = vmatpush3.bf16.msra.mxu1 %v2013_v7 }
0x1822   :  { %v3820_v9 = vpop.eup %3819  ;;  %3616 = vmatprep.subr.bf16.mxu1 %v3877_v15 }
0x1823   :  { %v2003_v11 = vmul.f32 %v3820_v9, %v3816_v63  ;;  %v2201_v35 = vpop.permute.xlu0 %2200 }
0x1825   :  { %v2005_v31 = vpack.c.bf16 %v2003_v11, %v2003_v11 }
0x1826   :  { %v3822_v12 = vpop.eup %3821 }
0x1827   :  { %v2004_v14 = vmul.f32 %v3822_v12, %v3818_v1  ;;  %3607 = vmatmul.mubr.msk.bf16.vlgmr.msra.gmra.mrb[60].mxu1 %vm212_vm2, %v2005_v31 }
0x1828   :  { %3617 = vmatpush3.bf16.msra.mxu1 %v2110_v32  ;;  %3618 = vmatprep.mubr.msk.bf16.mxu1 %vm3878_vm1, %v3877_v15 }
0x1829   :  { %v2006_v16 = vpack.c.bf16 %v2004_v14, %v2004_v14  ;;  %3628 = vmatprep.subr.bf16.mxu1 %v3877_v15 }
0x182b   :  { %3613 = vmatmul.mubr.msk.bf16.vlgmr.msra.gmra.mrb[60].mxu0 %vm212_vm2, %v2006_v16 }
0x182c   :  { %3623 = vmatpush3.bf16.msra.mxu0 %v2157_v17  ;;  %3624 = vmatprep.mubr.msk.bf16.mxu0 %vm3878_vm1, %v3877_v15 }
0x182d   :  { %3634 = vmatprep.subr.bf16.mxu0 %v3877_v15 }
0x1833   :  { %3625 = vmatmul.mubr.msk.bf16.vlgmr.msra.gmra.mrb[64].mxu0 %vm212_vm2, %v1876_v29  ;;  %v2208_v29 = vsel %vm212_vm2, %v2203_v18, 0 }
0x1834   :  { %3636 = vmatprep.mubr.msk.bf16.mxu0 %vm3878_vm1, %v3877_v15 }
0x1835   :  { %3635 = vmatpush3.bf16.xpose.msra.mxu0 %v2258_v20 }
0x1836   :  { %3646 = vmatprep.subr.bf16.mxu0 %v3877_v15 }
0x183c   :  { %3637 = vmatmul.mubr.msk.bf16.vlgmr.msra.gmra.mrb[68].mxu0 %vm212_vm2, %v2251_v21 }
0x183d   :  { %3648 = vmatprep.mubr.msk.bf16.mxu0 %vm3878_vm1, %v3877_v15 }
0x18fa   :  { %v2049_v5 = vpop.f32.mrb[60].mxu1 }
0x18fb   :  { %v3608_v22 = vpop.f32.mrb[61].mxu1 }
0x18fc   :  { %v2052_v23 = vpop.f32.mrb[62].mxu1 }
0x18fd   :  { %v3609_v8 = vpop.f32.mrb[63].mxu1 }
0x18fe   :  { %v2097_v24 = vpop.f32.mrb[60].mxu0 }
0x18ff   :  { %v2103_v25 = vpack.c.bf16 %v2097_v24, %v2049_v5  ;;  %v3614_v26 = vpop.f32.mrb[61].mxu0 }
0x1900   :  { %v2100_v28 = vpop.f32.mrb[62].mxu0 }
0x1901   :  { %v3615_v30 = vpop.f32.mrb[63].mxu0  ;;  %3619 = vmatmul.mubr.msk.bf16.vlgmr.msra.gmra.mrb[64].mxu1 %vm212_vm2, %v2103_v25  ;;  %v3254_v28 = vld [vmem:[%s4633_s6 + $0x18] sm:$0xf] }
0x1902   :  { %3629 = vmatpush3.bf16.xpose.msra.mxu1 %v2208_v29  ;;  %3630 = vmatprep.mubr.msk.bf16.mxu1 %vm3878_vm1, %v3877_v15  ;;  %v2431_v29 = vsel %vm351_vm3, %v3254_v28, 0 }
0x1903   :  { %3640 = vmatprep.subr.bf16.mxu1 %v3877_v15 }
0x1906   :  { %v2193_v33 = vpop.f32.mrb[64].mxu0 }
0x1907   :  { %v3626_v34 = vpop.f32.mrb[65].mxu0 }
0x1908   :  { %v2196_v36 = vpop.f32.mrb[66].mxu0 }
0x1909   :  { %v3627_v37 = vpop.f32.mrb[67].mxu0  ;;  %3631 = vmatmul.mubr.msk.bf16.vlgmr.msra.gmra.mrb[68].mxu1 %vm212_vm2, %v2201_v35 }
0x190a   :  { %3642 = vmatprep.mubr.msk.bf16.mxu1 %vm3878_vm1, %v3877_v15 }
0x190f   :  { %v2294_v40 = vpop.f32.mrb[68].mxu0 }
0x1910   :  { %v2301_v41 = vmul.f32 0.35355338, %v2294_v40  ;;  %v3638_v43 = vpop.f32.mrb[69].mxu0 }
0x1911   :  { %v2297_v44 = vpop.f32.mrb[70].mxu0 }
0x1912   :  { %v3639_v45 = vpop.f32.mrb[71].mxu0  ;;  %v2303_v46 = vadd.f32 %v2301_v41, %v4064_v62 }
0x1914   :  { %v2307_v47 = vsel %vm212_vm2, %v2303_v46, -inf }
0x1915   :  { %2308 = vmax.xlane.f32.xlu1 %v2307_v47 }
0x1926   :  { %2376 = vrot.lane.b32.xlu1 %v4333_v38, %s4668_s4 }
0x192a   :  { %2478 = vrot.lane.b32.xlu1 %v4331_v39, %s4669_s29 }
0x192e   :  { %2528 = vrot.lane.b32.xlu1 %v4333_v38, %s4669_s29 }
0x1932   :  { %2526 = vrot.lane.b32.xlu1 %v4333_v38, %s4670_s30 }
0x19a2   :  { %v2309_v48 = vpop.xlane.xlu1 %2308 }
0x19a3   :  { %v2311_v51 = vsub.f32 %v2303_v46, %v2309_v48 }
0x19a5   :  { %v2314_v52 = vmul.f32 1.442695, %v2311_v51 }
0x19a6   :  { %v2377_v49 = vpop.permute.xlu1 %2376 }
0x19a7   :  { %v2382_v50 = vsel %vm351_vm3, %v2377_v49, 0  ;;  %3823 = vpow2.f32 %v2314_v52 }
0x19a8   :  { %3647 = vmatpush3.bf16.msra.mxu0 %v2382_v50 }
0x19a9   :  { %3658 = vmatprep.subr.bf16.mxu0 %v3877_v15 }
0x19aa   :  { %v2479_v14 = vpop.permute.xlu1 %2478 }
0x19ab   :  { %v2484_v17 = vsel %vm212_vm2, %v2479_v14, 0 }
0x19ae   :  { %v2529_v41 = vpop.permute.xlu1 %2528 }
0x19af   :  { %v2534_v47 = vsel %vm212_vm2, %v2529_v41, 0 }
0x19b1   :  { %v3824_v4 = vpop.eup %3823 }
0x19b2   :  { %v2319_v6 = vsel %vm212_vm2, %v3824_v4, 0.0 }
0x19d4   :  { %v2146_v53 = vpop.f32.mrb[64].mxu1 }
0x19d5   :  { %v4464_v54 = vadd.f32 %v2193_v33, %v2146_v53  ;;  %v3620_v55 = vpop.f32.mrb[65].mxu1 }
0x19d6   :  { %v2149_v56 = vpop.f32.mrb[66].mxu1 }
0x19d7   :  { %v4466_v57 = vadd.f32 %v2196_v36, %v2149_v56  ;;  %v3621_v59 = vpop.f32.mrb[67].mxu1 }
0x19dc   :  { %v2244_v60 = vpop.f32.mrb[68].mxu1 }
0x19dd   :  { %v2300_v61 = vmul.f32 0.35355338, %v2244_v60  ;;  %v3632_v63 = vpop.f32.mrb[69].mxu1 }
0x19de   :  { %v2247_v0 = vpop.f32.mrb[70].mxu1 }
0x19df   :  { %v3633_v1 = vpop.f32.mrb[71].mxu1  ;;  %v2302_v2 = vadd.f32 %v2300_v61, %v4062_v58 }
0x19e1   :  { %v2304_v3 = vsel %vm212_vm2, %v2302_v2, -inf }
0x19e2   :  { %2305 = vmax.xlane.f32.xlu0 %v2304_v3 }
0x19e6   :  { %2320 = vadd.xlane.f32.xlu0 %v2319_v6 }
0x1a6f   :  { %v2306_v7 = vpop.xlane.xlu0 %2305 }
0x1a70   :  { %v2310_v9 = vsub.f32 %v2302_v2, %v2306_v7 }
0x1a72   :  { %v2312_v10 = vmul.f32 1.442695, %v2310_v9 }
0x1a73   :  { %v2321_v11 = vpop.xlane.xlu0 %2320 }
0x1a74   :  { %3825 = vpow2.f32 %v2312_v10 }
0x1a75   :  { %3827 = vrcp.f32 %v2321_v11 }
0x1a7e   :  { %v3826_v31 = vpop.eup %3825 }
0x1a7f   :  { %v3828_v32 = vpop.eup %3827  ;;  %v2316_v12 = vsel %vm212_vm2, %v3826_v31, 0.0 }
0x1a80   :  { %v2325_v13 = vmul.f32 %v3828_v32, %v3824_v4  ;;  %2317 = vadd.xlane.f32.xlu0 %v2316_v12 }
0x1a82   :  { %v2327_v16 = vpack.c.bf16 %v2325_v13, %v2325_v13 }
0x1a84   :  { %3649 = vmatmul.mubr.msk.bf16.vlgmr.msra.gmra.mrb[72].mxu0 %vm212_vm2, %v2327_v16 }
0x1a85   :  { %3659 = vmatpush3.bf16.xpose.msra.mxu0 %v2484_v17  ;;  %3660 = vmatprep.mubr.msk.bf16.mxu0 %vm3878_vm1, %v3877_v15 }
0x1a86   :  { %3670 = vmatprep.subr.bf16.mxu0 %v3877_v15 }
0x1a96   :  { %2328 = vrot.lane.b32.xlu0 %v4331_v39, %s4668_s4 }
0x1a9a   :  { %2476 = vrot.lane.b32.xlu0 %v4331_v39, %s4670_s30 }
0x1b0d   :  { %v2318_v18 = vpop.xlane.xlu0 %2317 }
0x1b0e   :  { %3829 = vrcp.f32 %v2318_v18 }
0x1b11   :  { %v2329_v19 = vpop.permute.xlu0 %2328 }
0x1b12   :  { %v2334_v20 = vsel %vm351_vm3, %v2329_v19, 0 }
0x1b13   :  { %3641 = vmatpush3.bf16.msra.mxu1 %v2334_v20  ;;  %v3260_v20 = vld [vmem:[%s4633_s6 + $0x1c] sm:$0xf] }
0x1b14   :  { %3652 = vmatprep.subr.bf16.mxu1 %v3877_v15 }
0x1b15   :  { %v2477_v21 = vpop.permute.xlu0 %2476 }
0x1b16   :  { %3661 = vmatmul.mubr.msk.bf16.vlgmr.msra.gmra.mrb[76].mxu0 %vm212_vm2, %v2477_v21  ;;  %v2707_v21 = vsel %vm351_vm3, %v3260_v20, 0 }
0x1b17   :  { %3672 = vmatprep.mubr.msk.bf16.mxu0 %vm3878_vm1, %v3877_v15 }
0x1b18   :  { %v3830_v5 = vpop.eup %3829 }
0x1b19   :  { %v2324_v22 = vmul.f32 %v3830_v5, %v3826_v31 }
0x1b1b   :  { %v2326_v23 = vpack.c.bf16 %v2324_v22, %v2324_v22 }
0x1b1d   :  { %3643 = vmatmul.mubr.msk.bf16.vlgmr.msra.gmra.mrb[72].mxu1 %vm212_vm2, %v2326_v23 }
0x1b1e   :  { %3654 = vmatprep.mubr.msk.bf16.mxu1 %vm3878_vm1, %v3877_v15  ;;  %3653 = vmatpush3.bf16.msra.mxu1 %v2431_v29 }
0x1b1f   :  { %3664 = vmatprep.subr.bf16.mxu1 %v3877_v15 }
0x1b57   :  { %v2418_v8 = vpop.f32.mrb[72].mxu0 }
0x1b58   :  { %v3650_v24 = vpop.f32.mrb[73].mxu0 }
0x1b59   :  { %v2421_v25 = vpop.f32.mrb[74].mxu0 }
0x1b5a   :  { %v3651_v26 = vpop.f32.mrb[75].mxu0 }
0x1be9   :  { %v2520_v30 = vpop.f32.mrb[76].mxu0 }
0x1bea   :  { %v2576_v33 = vmul.f32 0.35355338, %v2520_v30  ;;  %v3662_v34 = vpop.f32.mrb[77].mxu0 }
0x1beb   :  { %v2523_v35 = vpop.f32.mrb[78].mxu0 }
0x1bec   :  { %v3663_v36 = vpop.f32.mrb[79].mxu0  ;;  %v2578_v37 = vadd.f32 %v2576_v33, %v4062_v58  ;;  %v2527_v58 = vpop.permute.xlu1 %2526  ;;  %v3263_v33 = vld [vmem:[%s4634_s7 + $0x1] ss:$0 sm:$0xff] }
0x1bee   :  { %v2580_v40 = vsel %vm212_vm2, %v2578_v37, -inf }
0x1bef   :  { %2581 = vmax.xlane.f32.xlu0 %v2580_v40 }
0x1bf0   :  { %v2370_v43 = vpop.f32.mrb[72].mxu1 }
0x1bf1   :  { %v2424_v44 = vpack.c.bf16 %v2418_v8, %v2370_v43  ;;  %v3644_v45 = vpop.f32.mrb[73].mxu1 }
0x1bf2   :  { %v2373_v46 = vpop.f32.mrb[74].mxu1 }
0x1bf3   :  { %v3645_v48 = vpop.f32.mrb[75].mxu1  ;;  %3655 = vmatmul.mubr.msk.bf16.vlgmr.msra.gmra.mrb[76].mxu1 %vm212_vm2, %v2424_v44 }
0x1bf4   :  { %3665 = vmatpush3.bf16.xpose.msra.mxu1 %v2534_v47  ;;  %3666 = vmatprep.mubr.msk.bf16.mxu1 %vm3878_vm1, %v3877_v15 }
0x1bf5   :  { %3676 = vmatprep.subr.bf16.mxu1 %v3877_v15 }
0x1bfb   :  { %3667 = vmatmul.mubr.msk.bf16.vlgmr.msra.gmra.mrb[80].mxu1 %vm212_vm2, %v2527_v58 }
0x1bfc   :  { %3678 = vmatprep.mubr.msk.bf16.mxu1 %vm3878_vm1, %v3877_v15 }
0x1c7c   :  { %v2582_v49 = vpop.xlane.xlu0 %2581 }
0x1c7d   :  { %v2586_v50 = vsub.f32 %v2578_v37, %v2582_v49 }
0x1c7f   :  { %v2588_v51 = vmul.f32 1.442695, %v2586_v50 }
0x1c81   :  { %3831 = vpow2.f32 %v2588_v51 }
0x1c8b   :  { %v3832_v52 = vpop.eup %3831 }
0x1c8c   :  { %v2592_v53 = vsel %vm212_vm2, %v3832_v52, 0.0 }
0x1c8d   :  { %2593 = vadd.xlane.f32.xlu0 %v2592_v53 }
0x1cc6   :  { %v2467_v55 = vpop.f32.mrb[76].mxu1 }
0x1cc7   :  { %v2474_v56 = vadd.f32 %v2467_v55, %v4464_v54  ;;  %v3656_v59 = vpop.f32.mrb[77].mxu1 }
0x1cc8   :  { %v2470_v60 = vpop.f32.mrb[78].mxu1  ;;  %v3750_v59 = vld [vmem:[%s4637_s10 + $0x18] sm:$0xff]  }
0x1cc9   :  { %v2475_v61 = vadd.f32 %v2470_v60, %v4466_v57  ;;  %v3657_v63 = vpop.f32.mrb[79].mxu1 }
0x1cce   :  { %v2570_v0 = vpop.f32.mrb[80].mxu1 }
0x1ccf   :  { %v2577_v1 = vmul.f32 0.35355338, %v2570_v0  ;;  %v3668_v2 = vpop.f32.mrb[81].mxu1 }
0x1cd0   :  { %v2573_v3 = vpop.f32.mrb[82].mxu1 }
0x1cd1   :  { %v3669_v4 = vpop.f32.mrb[83].mxu1  ;;  %v2579_v6 = vadd.f32 %v2577_v1, %v4064_v62 }
0x1cd2   :  { %v3266_v4 = vld [vmem:[%s4635_s8 + $0x1] ss:$0 sm:$0xff] }
0x1cd3   :  { %v2583_v7 = vsel %vm212_vm2, %v2579_v6, -inf }
0x1cd4   :  { %2584 = vmax.xlane.f32.xlu1 %v2583_v7 }
0x1ce5   :  { %2652 = vrot.lane.b32.xlu1 %v4333_v38, %s4671_s21 }
0x1d1a   :  { %v2594_v62 = vpop.xlane.xlu0 %2593 }
0x1d61   :  { %v2585_v9 = vpop.xlane.xlu1 %2584 }
0x1d62   :  { %v2587_v54 = vsub.f32 %v2579_v6, %v2585_v9 }
0x1d64   :  { %v2590_v10 = vmul.f32 1.442695, %v2587_v54 }
0x1d65   :  { %v2653_v11 = vpop.permute.xlu1 %2652 }
0x1d66   :  { %3833 = vpow2.f32 %v2590_v10  ;;  %v2658_v57 = vsel %vm351_vm3, %v2653_v11, 0  ;;  %v3267_v10 = vld [vmem:[%s4636_s9 + $0x1] ss:$0 sm:$0xff] }
0x1d67   :  { %3677 = vmatpush3.bf16.msra.mxu1 %v2658_v57  ;;  %3835 = vrcp.f32 %v2594_v62  ;;  %v3751_v62 = vld [vmem:[%s4639_s12 + $0x20] sm:$0xff]  }
0x1d68   :  { %3688 = vmatprep.subr.bf16.mxu1 %v3877_v15 }
0x1d70   :  { %v3834_v31 = vpop.eup %3833 }
0x1d71   :  { %v2595_v32 = vsel %vm212_vm2, %v3834_v31, 0.0  ;;  %v3836_v38 = vpop.eup %3835 }
0x1d72   :  { %2596 = vadd.xlane.f32.xlu0 %v2595_v32  ;;  %v2600_v13 = vmul.f32 %v3836_v38, %v3832_v52  ;;  %v3752_v38 = vld [vmem:[%s4639_s12 + $0x28] sm:$0xff]  }
0x1d74   :  { %v2602_v17 = vpack.c.bf16 %v2600_v13, %v2600_v13  ;;  %v3754_v13 = vld [vmem:[%s4639_s12 + $0x38] sm:$0xff]  }
0x1d88   :  { %2604 = vrot.lane.b32.xlu0 %v4331_v39, %s4671_s21 }
0x1dff   :  { %v2597_v12 = vpop.xlane.xlu0 %2596 }
0x1e00   :  { %3837 = vrcp.f32 %v2597_v12  ;;  %v3753_v12 = vld [vmem:[%s4639_s12 + $0x30] sm:$0xff]  }
0x1e03   :  { %v2605_v14 = vpop.permute.xlu0 %2604 }
0x1e04   :  { %v2610_v16 = vsel %vm351_vm3, %v2605_v14, 0  ;;  %v3273_v14 = vld [vmem:[%s4638_s11 + $0x1] ss:$0 sm:$0xff] }
0x1e05   :  { %3671 = vmatpush3.bf16.msra.mxu0 %v2610_v16 }
0x1e06   :  { %3682 = vmatprep.subr.bf16.mxu0 %v3877_v15 }
0x1e08   :  { %3673 = vmatmul.mubr.msk.bf16.vlgmr.msra.gmra.mrb[80].mxu0 %vm212_vm2, %v2602_v17 }
0x1e09   :  { %3684 = vmatprep.mubr.msk.bf16.mxu0 %vm3878_vm1, %v3877_v15  ;;  %3683 = vmatpush3.bf16.msra.mxu0 %v2707_v21 }
0x1e0a   :  { %v3838_v18 = vpop.eup %3837  ;;  %3696 = vmatprep.subr.bf16.mxu0 %v3877_v15 }
0x1e0b   :  { %v2601_v39 = vmul.f32 %v3838_v18, %v3834_v31 }
0x1e0d   :  { %v2603_v19 = vpack.c.bf16 %v2601_v39, %v2601_v39 }
0x1e0f   :  { %3679 = vmatmul.mubr.msk.bf16.vlgmr.msra.gmra.mrb[84].mxu1 %vm212_vm2, %v2603_v19 }
0x1e10   :  { %3692 = vmatprep.mubr.msk.bf16.mxu1 %vm3878_vm1, %v3877_v15 }
0x1edb   :  { %v2646_v5 = vpop.f32.mrb[80].mxu0 }
0x1edc   :  { %v3674_v22 = vpop.f32.mrb[81].mxu0 }
0x1edd   :  { %v2649_v23 = vpop.f32.mrb[82].mxu0 }
0x1ede   :  { %v3675_v8 = vpop.f32.mrb[83].mxu0 }
0x1ee2   :  { %v2694_v24 = vpop.f32.mrb[84].mxu1 }
0x1ee3   :  { %v2700_v25 = vpack.c.bf16 %v2694_v24, %v2646_v5  ;;  %v3680_v26 = vpop.f32.mrb[85].mxu1 }
0x1ee4   :  { %v2697_v28 = vpop.f32.mrb[86].mxu1 }
0x1ee5   :  { %v3681_v29 = vpop.f32.mrb[87].mxu1  ;;  %3685 = vmatmul.mubr.msk.bf16.vlgmr.msra.gmra.mrb[84].mxu0 %vm212_vm2, %v2700_v25 }
0x1ee6   :  { %3704 = vmatprep.mubr.msk.bf16.mxu0 %vm3878_vm1, %v3877_v15  ;;  %3697 = vmatpush3.bf16.msra.mxu0 %v3751_v62 }
0x1ee7   :  { %3698 = vmatprep.subr.bf16.mxu0 %v3877_v15 }
0x1eea   :  { %3699 = vmatpush3.bf16.msra.mxu0 %v3752_v38 }
0x1eeb   :  { %3700 = vmatprep.subr.bf16.mxu0 %v3877_v15 }
0x1eee   :  { %3701 = vmatpush3.bf16.msra.mxu0 %v3753_v12 }
0x1eef   :  { %3702 = vmatprep.subr.bf16.mxu0 %v3877_v15 }
0x1ef2   :  { %3703 = vmatpush3.bf16.msra.mxu0 %v3754_v13 }
0x1fb8   :  { %v2743_v30 = vpop.f32.mrb[84].mxu0 }
0x1fb9   :  { %v2750_v34 = vadd.f32 %v2743_v30, %v2474_v56  ;;  %v3686_v35 = vpop.f32.mrb[85].mxu0 }
0x1fba   :  { %v2746_v36 = vpop.f32.mrb[86].mxu0 }
0x1fbb   :  { %v2760_v37 = vadd.f32 %v3263_v33, %v2750_v34  ;;  %v2751_v40 = vadd.f32 %v2746_v36, %v2475_v61  ;;  %v3687_v41 = vpop.f32.mrb[87].mxu0 }
0x1fbd   :  { %v2761_v43 = vadd.f32 %v3263_v33, %v2751_v40  ;;  %v2762_v44 = vadd.f32 %v2760_v37, %v4319_v27  ;;  %v3286_v33 = vld [vmem:[%s4640_s13 + $0x1] ss:$0 sm:$0xff] }
0x1fbf   :  { %v2768_v45 = vsel %vm71_vm0, %v2762_v44, 0.0  ;;  %v2763_v46 = vadd.f32 %v2761_v43, %v4321_v42  ;;  %v3749_v42 = vld [vmem:[%s4637_s10 + $0x10] sm:$0xff]  }
0x1fc0   :  { %2769 = vadd.xlane.f32.xlu1 %v2768_v45  ;;  %3689 = vmatpush3.bf16.msra.mxu1 %v3749_v42  ;;  %v3756_v42 = vld [vmem:[%s4643_s16 + $0x8] sm:$0xff]  }
0x1fc1   :  { %v2771_v47 = vsel %vm71_vm0, %v2763_v46, 0.0  ;;  %3690 = vmatprep.subr.bf16.mxu1 %v3877_v15 }
0x1fc2   :  { %2772 = vadd.xlane.f32.xlu0 %v2771_v47 }
0x1fc4   :  { %3691 = vmatpush3.bf16.msra.mxu1 %v3750_v59 }
0x1fc5   :  { %3708 = vmatprep.subr.bf16.mxu1 %v3877_v15 }
0x204d   :  { %v2770_v48 = vpop.xlane.xlu1 %2769 }
0x204e   :  { %v2774_v58 = vmul.f32 0.03125, %v2770_v48 }
0x204f   :  { %v2773_v49 = vpop.xlane.xlu0 %2772 }
0x2050   :  { %v2776_v50 = vsub.f32 %v2762_v44, %v2774_v58  ;;  %v2775_v51 = vmul.f32 0.03125, %v2773_v49 }
0x2052   :  { %v2777_v52 = vsub.f32 %v2763_v46, %v2775_v51  ;;  %v2778_v53 = vmul.f32 %v2776_v50, %v2776_v50 }
0x2054   :  { %v2780_v55 = vsel %vm71_vm0, %v2778_v53, 0.0  ;;  %v2779_v56 = vmul.f32 %v2777_v52, %v2777_v52 }
0x2055   :  { %2781 = vadd.xlane.f32.xlu0 %v2780_v55 }
0x2056   :  { %v2783_v27 = vsel %vm71_vm0, %v2779_v56, 0.0 }
0x2057   :  { %2784 = vadd.xlane.f32.xlu1 %v2783_v27  ;;  %v3755_v27 = vld [vmem:[%s4643_s16] sm:$0xff]  }
0x20e2   :  { %v2782_v60 = vpop.xlane.xlu0 %2781 }
0x20e3   :  { %v2786_v61 = vmul.f32 0.03125, %v2782_v60 }
0x20e4   :  { %v2785_v63 = vpop.xlane.xlu1 %2784 }
0x20e5   :  { %v2788_v0 = vadd.f32 1e-12, %v2786_v61  ;;  %v2787_v1 = vmul.f32 0.03125, %v2785_v63 }
0x20e7   :  { %3839 = vrsqrt.f32 %v2788_v0  ;;  %v2789_v2 = vadd.f32 1e-12, %v2787_v1 }
0x20e9   :  { %3841 = vrsqrt.f32 %v2789_v2 }
0x20f1   :  { %v3840_v3 = vpop.eup %3839 }
0x20f2   :  { %v2792_v6 = vmul.f32 %v3840_v3, %v2776_v50  ;;  %v3294_v3 = vld [vmem:[%s4641_s14 + $0x1] ss:$0 sm:$0xff] }
0x20f3   :  { %v3842_v7 = vpop.eup %3841 }
0x20f4   :  { %v2800_v9 = vmul.f32 %v3266_v4, %v2792_v6  ;;  %v2793_v54 = vmul.f32 %v3842_v7, %v2777_v52  ;;  %v3295_v7 = vld [vmem:[%s4642_s15 + $0x1] ss:$0 sm:$0xff] }
0x20f6   :  { %v2801_v11 = vmul.f32 %v3266_v4, %v2793_v54  ;;  %v2808_v57 = vadd.f32 %v3267_v10, %v2800_v9 }
0x20f8   :  { %v2809_v31 = vadd.f32 %v3267_v10, %v2801_v11 }
0x20fa   :  { %v2810_v32 = vpack.c.bf16 %v2809_v31, %v2808_v57 }
0x20fc   :  { %3693 = vmatmul.mubr.msk.bf16.vlgmr.msra.gmra.mrb[88].mxu1 %vm71_vm0, %v2810_v32 }
0x20fd   :  { %3712 = vmatprep.mubr.msk.bf16.mxu1 %vm3878_vm1, %v3877_v15  ;;  %3709 = vmatpush3.bf16.msra.mxu1 %v3755_v27 }
0x20fe   :  { %3710 = vmatprep.subr.bf16.mxu1 %v3877_v15 }
0x2101   :  { %3711 = vmatpush3.bf16.msra.mxu1 %v3756_v42 }
0x2102   :  { %3716 = vmatprep.subr.bf16.mxu1 %v3877_v15 }
0x21cf   :  { %v2873_v16 = vpop.f32.mrb[88].mxu1 }
0x21d0   :  { %v2874_v17 = vadd.f32 %v3273_v14, %v2873_v16  ;;  %v3694_v18 = vpop.f32.mrb[89].mxu1  ;;  %v3757_v16 = vld [vmem:[%s4645_s18] sm:$0xff]  }
0x21d1   :  { %v2876_v39 = vpop.f32.mrb[90].mxu1  ;;  %v3296_v18 = vld [vmem:[%s4644_s17] ss:$0 sm:$0xff] }
0x21d2   :  { %v2882_v19 = vmul.f32 0.70710677, %v2874_v17  ;;  %v2877_v20 = vadd.f32 %v3273_v14, %v2876_v39  ;;  %v3695_v21 = vpop.f32.mrb[91].mxu1  ;;  %v2880_v24 = vmul.f32 0.5, %v2874_v17  ;;  %v3758_v17 = vld [vmem:[%s4645_s18 + $0x8] sm:$0xff]   ;;  %s3891_s18 = smov [#allocation2]  }
0x21d3   :  { %s3176_s4 = sshll.u32 %s3891_s18, 4  ;;  %s3177_s4 = int_to_ptr.vmem [resolvable:$true] %s3176_s4 }
0x21d4   :  { %3843 = verf.f32 %v2882_v19  ;;  %v2883_v5 = vmul.f32 0.70710677, %v2877_v20  ;;  %v2881_v25 = vmul.f32 0.5, %v2877_v20  ;;  %s3853_s17 = scalar_lea.vmem %s3177_s4, 32  ;;  %p3858_p1 = scmp.lt.s32.totalorder %s3177_s4, %s3177_s4 }
0x21d5   :  { %p3854_p0 = scmp.ne.s32.totalorder %s3177_s4, %s3853_s17  ;;  %p3859_p2 = scmp.lt.s32.totalorder %s3853_s17, %s3853_s17 }
0x21d6   :  { %3845 = verf.f32 %v2883_v5 }
0x21d7   :  { %p3860_p3 = por %p3859_p2, %p3858_p1 }
0x21d9   :  { %p3861_p4 = pnand %p3860_p3, %p3854_p0 }
0x21de   :  { %v3844_v22 = vpop.eup %3843 }
0x21df   :  { %v2886_v23 = vadd.f32 1.0, %v3844_v22 }
0x21e0   :  { %v3846_v8 = vpop.eup %3845 }
0x21e1   :  { %v2887_v26 = vadd.f32 1.0, %v3846_v8  ;;  %v2888_v28 = vmul.f32 %v2886_v23, %v2880_v24 }
0x21e3   :  { %v2889_v29 = vmul.f32 %v2887_v26, %v2881_v25 }
0x21e5   :  { %v2890_v30 = vpack.c.bf16 %v2889_v29, %v2888_v28 }
0x21e7   :  { %3705 = vmatmul.mubr.msk.bf16.vlgmr.msra.gmra.mrb[88].mxu0 %vm1491_vm4, %v2890_v30 }
0x22ba   :  { %v2969_v34 = vpop.f32.mrb[88].mxu0 }
0x22bb   :  { %v2970_v35 = vadd.f32 %v3286_v33, %v2969_v34  ;;  %v3706_v36 = vpop.f32.mrb[89].mxu0 }
0x22bc   :  { %v2972_v37 = vpop.f32.mrb[90].mxu0 }
0x22bd   :  { %v2973_v40 = vadd.f32 %v3286_v33, %v2972_v37  ;;  %v3707_v41 = vpop.f32.mrb[91].mxu0  ;;  %v2976_v43 = vadd.f32 %v2970_v35, %v2808_v57 }
0x22bf   :  { %v2982_v44 = vsel %vm71_vm0, %v2976_v43, 0.0  ;;  %v2977_v45 = vadd.f32 %v2973_v40, %v2809_v31 }
0x22c0   :  { %2983 = vadd.xlane.f32.xlu1 %v2982_v44 }
0x22c1   :  { %v2985_v46 = vsel %vm71_vm0, %v2977_v45, 0.0 }
0x22c2   :  { %2986 = vadd.xlane.f32.xlu0 %v2985_v46 }
0x234d   :  { %v2984_v47 = vpop.xlane.xlu1 %2983 }
0x234e   :  { %v2988_v48 = vmul.f32 0.03125, %v2984_v47 }
0x234f   :  { %v2987_v58 = vpop.xlane.xlu0 %2986 }
0x2350   :  { %v2990_v49 = vsub.f32 %v2976_v43, %v2988_v48  ;;  %v2989_v50 = vmul.f32 0.03125, %v2987_v58 }
0x2352   :  { %v2991_v51 = vsub.f32 %v2977_v45, %v2989_v50  ;;  %v2992_v52 = vmul.f32 %v2990_v49, %v2990_v49 }
0x2354   :  { %v2994_v53 = vsel %vm71_vm0, %v2992_v52, 0.0  ;;  %v2993_v55 = vmul.f32 %v2991_v51, %v2991_v51 }
0x2355   :  { %2995 = vadd.xlane.f32.xlu1 %v2994_v53 }
0x2356   :  { %v2997_v56 = vsel %vm71_vm0, %v2993_v55, 0.0 }
0x2357   :  { %2998 = vadd.xlane.f32.xlu0 %v2997_v56 }
0x23e2   :  { %v2996_v59 = vpop.xlane.xlu1 %2995 }
0x23e3   :  { %v3000_v60 = vmul.f32 0.03125, %v2996_v59 }
0x23e4   :  { %v2999_v61 = vpop.xlane.xlu0 %2998 }
0x23e5   :  { %v3002_v63 = vadd.f32 1e-12, %v3000_v60  ;;  %v3001_v0 = vmul.f32 0.03125, %v2999_v61 }
0x23e7   :  { %3847 = vrsqrt.f32 %v3002_v63  ;;  %v3003_v1 = vadd.f32 1e-12, %v3001_v0 }
0x23e9   :  { %3849 = vrsqrt.f32 %v3003_v1 }
0x23f1   :  { %v3848_v2 = vpop.eup %3847 }
0x23f2   :  { %v3006_v4 = vmul.f32 %v3848_v2, %v2990_v49 }
0x23f3   :  { %v3850_v6 = vpop.eup %3849 }
0x23f4   :  { %v3014_v9 = vmul.f32 %v3294_v3, %v3006_v4  ;;  %v3007_v54 = vmul.f32 %v3850_v6, %v2991_v51 }
0x23f6   :  { %v3022_v10 = vadd.f32 %v3295_v7, %v3014_v9  ;;  %v3015_v11 = vmul.f32 %v3294_v3, %v3007_v54 }
0x23f8   :  { %v3023_v57 = vadd.f32 %v3295_v7, %v3015_v11  ;;  %v3024_v31 = vpack.c.bf16 %v3022_v10, %v3022_v10 }
0x23fa   :  { %v3025_v32 = vpack.c.bf16 %v3023_v57, %v3023_v57  ;;  %v3039_v38 = vunpack.c.l.b16 %v3024_v31 }
0x23fc   :  { %v3040_v62 = vunpack.c.l.b16 %v3025_v32 }
0x23fe   :  { %v3041_v12 = vrot.slane %v3040_v62, 7 }
0x2400   :  { %v3043_v13 = vsel %vm3042_vm5, %v3041_v12, %v3039_v38 }
0x2401   :  { %v3044_v14 = vpack.c.b16 %v3043_v13, %v3043_v13 }
0x2403   :  { %3713 = vmatmul.mubr.msk.bf16.vlgmr.msra.gmra.mrb[92].mxu1 %vm71_vm0, %v3044_v14 }
0x2404   :  { %3720 = vmatprep.mubr.msk.bf16.mxu1 %vm3878_vm1, %v3877_v15  ;;  %3717 = vmatpush3.bf16.msra.mxu1 %v3757_v16 }
0x2405   :  { %3718 = vmatprep.subr.bf16.mxu1 %v3877_v15  ;;  %v3300_v15 = vld [vmem:[%s4646_s19] ss:$0 sm:$0xff] }
0x2408   :  { %3719 = vmatpush3.bf16.msra.mxu1 %v3758_v17 }
0x24d6   :  { %v3094_v39 = vpop.f32.mrb[92].mxu1 }
0x24d7   :  { %v3095_v19 = vadd.f32 %v3296_v18, %v3094_v39  ;;  %v3714_v20 = vpop.f32.mrb[93].mxu1 }
0x24d8   :  { %v3097_v21 = vpop.f32.mrb[94].mxu1 }
0x24d9   :  { %3851 = vtanh.f32 %v3095_v19  ;;  %v3715_v5 = vpop.f32.mrb[95].mxu1 }
0x24e3   :  { %v3852_v22 = vpop.eup %3851 }
0x24e4   :  { %v3101_v23 = vpack.c.bf16 %v3852_v22, %v3852_v22 }
0x24e6   :  { %3721 = vmatmul.mubr.msk.bf16.vlgmr.msra.gmra.mrb[96].mxu1 %vm71_vm0, %v3101_v23 }
0x25b9   :  { %v3162_v8 = vpop.f32.mrb[96].mxu1 }
0x25ba   :  { %v3163_v24 = vadd.f32 %v3300_v15, %v3162_v8  ;;  %v3722_v25 = vpop.f32.mrb[97].mxu1 }
0x25bb   :  { %v3165_v26 = vpop.f32.mrb[98].mxu1 }
0x25bc   :  { %v3723_v28 = vpop.f32.mrb[99].mxu1  ;;  %3169 = vst.msk [vmem:[#allocation2] sm:$0x3] %vm3168_vm6, %v3163_v24 }
0x25bd   :  { %3864 = shalt.err (!%p3861_p4)
}
0x25be   :  { %s3865_s19 = scalar_lea.hbm %s4647_s20, 32 }
0x25bf   :  { %p3866_p5 = scmp.ne.s32.totalorder %s4647_s20, %s3865_s19  ;;  %p3869_p6 = scmp.lt.u32.totalorder %s3865_s19, %s4647_s20 }
0x25c1   :  { %p3871_p7 = pnand %p3869_p6, %p3866_p5 }
0x25c3   :  { %3874 = shalt.err (!%p3871_p7)
}
0x25c4   :  { %3179 = dma.vmem_to_hbm [thread:$0]  %s3177_s4, 32, %s4647_s20, [#allocation3]  }
0x25c5   :  { %3875 = dma.done.wait [#allocation3], 32  }
0x25c6   :  { %3876 = vsyncadd [#allocation3], 4294967264 }
0x25c7   :  { %3183 = vsyncpa [#allocation3], 1 }

</bundles_post_ra>
